<compile_context>
chip_gen: v7x
topology: tpu7x:2x2x1
jax: 0.10.0
libtpu: 0.0.40
codegen_flags: <defaults>
</compile_context>

<pallas_src>
import functools

import jax
import jax.numpy as jnp
from jax.experimental import pallas as pl
from jax.experimental.pallas import tpu as pltpu


# ----------------------------------------------------------------------------
# Fused kernel: gcn_norm + n_layers of propagation, everything VMEM-resident.
#   x_{l+1} = D^{-1/2} (A + I) D^{-1/2} x_l
# computed via the exactly-equivalent z-space recurrence
#   z_0 = D^{-1/2} x,  z_{l+1} = D^{-1} (A z_l + z_l),  x_L = D^{1/2} z_L
# (per layer: one MXU matmul + one elementwise multiply + one add).
# ----------------------------------------------------------------------------
def _gcn_fused_kernel(a_ref, x_ref, o_ref, *, n_layers):
    a = a_ref[...].astype(jnp.float32)        # (N, N); bf16 0/1 -> f32 is exact
    x = x_ref[...].astype(jnp.float32)        # (N, F)
    n, f = x.shape

    # gcn_norm(add_self_loops=True): deg = (A + I).sum(1) = A.sum(1) + 1.
    deg = jnp.sum(a, axis=1, keepdims=True) + 1.0          # (N, 1)  XLU reduce
    d = jnp.where(deg > 0.0, jax.lax.rsqrt(deg), 0.0)      # D^{-1/2}   (EUP)

    # Hoisted broadcasts (JAX does not CSE broadcast_in_dim inside the
    # unrolled layer loop).
    inv_deg = jnp.broadcast_to(d * d, (n, f))              # D^{-1}
    z = d * x                                              # z_0 = D^{-1/2} x

    # n_layers is a static Python int -> unrolled at trace time.
    for _ in range(n_layers):
        z = inv_deg * (jnp.dot(a, z, preferred_element_type=jnp.float32) + z)

    o_ref[...] = (jnp.sqrt(deg) * z).astype(o_ref.dtype)   # x_L = D^{1/2} z_L


def gcn_propagate(adj, x, *, n_layers=2):
    """Fused  x <- Â^{n_layers} x,  Â = D^{-1/2}(A+I)D^{-1/2},  one pallas_call.

    `adj` may be f32 or bf16 (0/1 adjacencies are bit-exact in bf16 and halve
    the DMA bytes); computation is f32 end-to-end inside the kernel.
    """
    n, n2 = adj.shape
    nx, f = x.shape
    assert n == n2 and nx == n, "adjacency must be (N, N) and x (N, F)"

    # VMEM footprint (no grid -> no pipelining double buffers): the adjacency
    # as shipped + its f32 in-kernel copy + a handful of (N, F) f32 temporaries.
    a_bytes = n * n * adj.dtype.itemsize
    footprint = a_bytes + 4 * n * n + 8 * 4 * n * f
    try:
        vmem_cap = int(pltpu.get_tpu_info().vmem_capacity_bytes)
    except Exception:  # conservative: v7x has the smallest physical VMEM
        vmem_cap = 64 * 1024 * 1024
    assert 2 * footprint < vmem_cap, (
        "single-block fused GCN kernel needs the whole problem in VMEM; "
        "use a row-tiled variant for this graph size"
    )
    vmem_limit = int(min(vmem_cap, max(4 * footprint, 16 * 1024 * 1024)))

    return pl.pallas_call(
        functools.partial(_gcn_fused_kernel, n_layers=n_layers),
        out_shape=jax.ShapeDtypeStruct((n, f), jnp.float32),
        in_specs=[
            pl.BlockSpec(memory_space=pltpu.MemorySpace.VMEM),  # full A, resident
            pl.BlockSpec(memory_space=pltpu.MemorySpace.VMEM),  # full x, resident
        ],
        out_specs=pl.BlockSpec(memory_space=pltpu.MemorySpace.VMEM),
        compiler_params=pltpu.CompilerParams(vmem_limit_bytes=vmem_limit),
    )(adj, x)


# ----------------------------------------------------------------------------
# GNN module in JAX (mirrors the PyTorch module)
# ----------------------------------------------------------------------------
class GNN:
    def __init__(self, x_dims, y_dims, n_layers=2):
        self.n_layers = n_layers
        # torch.nn.Parameter(torch.zeros(x_dims, y_dims)) -> deterministic zeros.
        self.W = jnp.zeros((x_dims, y_dims), dtype=jnp.float32)

    def forward(self, adj, x):
        return gcn_propagate(adj, x, n_layers=self.n_layers)

    def pred(self, adj, x):
        _ = self.forward(adj, x)  # computed but (as in the reference) unused
        return x @ self.W


# Pure-JAX reference: explicit Â = D^{-1/2}(A+I)D^{-1/2}, then dense matmuls.
def reference_forward(adj, x, n_layers=2):
    n = adj.shape[0]
    a_hat = adj + jnp.eye(n, dtype=adj.dtype)
    deg = jnp.sum(a_hat, axis=1)
    d_inv_sqrt = jnp.where(deg > 0, jax.lax.rsqrt(deg), 0.0).astype(adj.dtype)
    adj_t = d_inv_sqrt[:, None] * a_hat * d_inv_sqrt[None, :]
    for _ in range(n_layers):
        x = adj_t @ x
    return x


if __name__ == "__main__":
    key = jax.random.PRNGKey(0)
    k1, k2 = jax.random.split(key)

    N = 256      # number of nodes
    x_dims = 64  # input feature dim (passed un-padded; full-array BlockSpec)
    y_dims = 16  # output dim of W (unused by forward, as in the reference)

    # Synthetic symmetric 0/1 adjacency (no self loops; the kernel adds them).
    raw = jax.random.uniform(k1, (N, N))
    adj_f32 = (raw + raw.T > 1.6).astype(jnp.float32)
    adj_f32 = adj_f32 * (1.0 - jnp.eye(N, dtype=jnp.float32))
    # 0/1 entries are bit-exact in bf16 -> halves the adjacency's HBM/DMA bytes.
    adj = adj_f32.astype(jnp.bfloat16)

    x = jax.random.normal(k2, (N, x_dims), dtype=jnp.float32)

    model = GNN(x_dims, y_dims, n_layers=2)
    out = jax.block_until_ready(model.forward(adj, x))

    ref = reference_forward(adj_f32, x, n_layers=2)
    assert out.shape == (N, x_dims)
    assert jnp.allclose(out, ref, atol=1e-4, rtol=1e-4), float(
        jnp.max(jnp.abs(out - ref))
    )

    print("KERNEL_OK")
</pallas_src>

<mosaic_0001>
module attributes {stable_mosaic.version = 11 : i64} {
  func.func @_gcn_fused_kernel(%arg0: memref<256x256xbf16, #tpu.memory_space<vmem>>, %arg1: memref<256x64xf32, #tpu.memory_space<vmem>>, %arg2: memref<256x64xf32, #tpu.memory_space<vmem>>) attributes {dimension_semantics = [], scalar_prefetch = 0 : i64, scratch_operands = 0 : i64, tpu.core_type = #tpu.core_type<tc>} {
    %c0 = arith.constant 0 : index
    %c0_0 = arith.constant 0 : index
    %0 = vector.load %arg0[%c0, %c0_0] : memref<256x256xbf16, #tpu.memory_space<vmem>>, vector<256x256xbf16>
    %1 = arith.extf %0 : vector<256x256xbf16> to vector<256x256xf32>
    %c0_1 = arith.constant 0 : index
    %c0_2 = arith.constant 0 : index
    %2 = vector.load %arg1[%c0_1, %c0_2] : memref<256x64xf32, #tpu.memory_space<vmem>>, vector<256x64xf32>
    %cst = arith.constant dense<0.000000e+00> : vector<256xf32>
    %3 = vector.multi_reduction <add>, %1, %cst [1] : vector<256x256xf32> to vector<256xf32>
    %4 = vector.shape_cast %3 : vector<256xf32> to vector<256x1xf32>
    %cst_3 = arith.constant 1.000000e+00 : f32
    %5 = vector.broadcast %cst_3 : f32 to vector<256x1xf32>
    %6 = arith.addf %4, %5 : vector<256x1xf32>
    %cst_4 = arith.constant 0.000000e+00 : f32
    %7 = vector.broadcast %cst_4 : f32 to vector<256x1xf32>
    %8 = arith.cmpf ogt, %6, %7 : vector<256x1xf32>
    %9 = math.rsqrt %6 : vector<256x1xf32>
    %cst_5 = arith.constant 0.000000e+00 : f32
    %10 = vector.broadcast %cst_5 : f32 to vector<256x1xf32>
    %11 = arith.select %8, %9, %10 : vector<256x1xi1>, vector<256x1xf32>
    %12 = arith.mulf %11, %11 : vector<256x1xf32>
    %13 = vector.shape_cast %12 : vector<256x1xf32> to vector<256x1xf32>
    %14 = vector.broadcast %13 : vector<256x1xf32> to vector<256x64xf32>
    %15 = vector.broadcast %11 : vector<256x1xf32> to vector<256x64xf32>
    %16 = arith.mulf %15, %2 : vector<256x64xf32>
    %cst_6 = arith.constant dense<0.000000e+00> : vector<256x64xf32>
    %17 = tpu.matmul %1, %16, %cst_6 {dimension_numbers = #tpu.dot_dimension_numbers<[1], [0], [0], [1], [0, 0, 1, 1], [], []>} : vector<256x256xf32>, vector<256x64xf32>, vector<256x64xf32> -> vector<256x64xf32>
    %18 = arith.addf %17, %16 : vector<256x64xf32>
    %19 = arith.mulf %14, %18 : vector<256x64xf32>
    %cst_7 = arith.constant dense<0.000000e+00> : vector<256x64xf32>
    %20 = tpu.matmul %1, %19, %cst_7 {dimension_numbers = #tpu.dot_dimension_numbers<[1], [0], [0], [1], [0, 0, 1, 1], [], []>} : vector<256x256xf32>, vector<256x64xf32>, vector<256x64xf32> -> vector<256x64xf32>
    %21 = arith.addf %20, %19 : vector<256x64xf32>
    %22 = arith.mulf %14, %21 : vector<256x64xf32>
    %23 = math.sqrt %6 : vector<256x1xf32>
    %24 = vector.broadcast %23 : vector<256x1xf32> to vector<256x64xf32>
    %25 = arith.mulf %24, %22 : vector<256x64xf32>
    %c0_8 = arith.constant 0 : index
    %c0_9 = arith.constant 0 : index
    %26 = vector.load %arg2[%c0_8, %c0_9] : memref<256x64xf32, #tpu.memory_space<vmem>>, vector<256x64xf32>
    tpu.vector_store %arg2[%c0_8, %c0_9], %25 {strides = array<i32>} : memref<256x64xf32, #tpu.memory_space<vmem>>, vector<256x64xf32>,
    return
  }
}

</mosaic_0001>

<bundles_post_ra>
// kernel: tpu_custom_call.1
= control target key start
LH: loop header
LB: loop body
LE: loop exit
PB: predicated region body
PF: predicated region fallthrough
CT: control target
= control target key end

     0   :  { %s3153_s0 = inlined_call_operand.vmem [shape: bf16[256,256], index: 0, kind: input, shape index: {}]   ;;  %s3154_s1 = inlined_call_operand.vmem [shape: f32[256,64], index: 1, kind: input, shape index: {}]   ;;  %s3155_s2 = inlined_call_operand.vmem [shape: f32[256,64], index: 2, kind: output, shape index: {}]  }
   0x1   :  { %v13_v0 = vld [vmem:[%s3153_s0 + $0x10] sm:$0xff]  ;;  %v11_v1 = vld [vmem:[%s3153_s0] sm:$0xff]  ;;  %v14_v2 = vld [vmem:[%s3153_s0 + $0x18] sm:$0xff] }
   0x2   :  { %v1420_v3 = vunpack.c.l.bf16 %v13_v0  ;;  %v1422_v4 = vunpack.c.h.bf16 %v13_v0  ;;  %v1424_v5 = vunpack.c.l.bf16 %v11_v1  ;;  %v44_v6 = vunpack.c.h.bf16 %v11_v1  ;;  %v12_v7 = vld [vmem:[%s3153_s0 + $0x8] sm:$0xff]  ;;  %v15_v13 = vld [vmem:[%s3153_s0 + $0x20] sm:$0xff]  ;;  %v18_v22 = vld [vmem:[%s3153_s0 + $0x38] sm:$0xff] }
   0x3   :  { %v16_v8 = vld [vmem:[%s3153_s0 + $0x28] sm:$0xff]  ;;  %v1432_v9 = vunpack.c.l.bf16 %v14_v2  ;;  %v1434_v10 = vunpack.c.h.bf16 %v14_v2  ;;  %v1436_v11 = vunpack.c.l.bf16 %v12_v7  ;;  %v1438_v12 = vunpack.c.h.bf16 %v12_v7  ;;  %v17_v23 = vld [vmem:[%s3153_s0 + $0x30] sm:$0xff]  ;;  %v19_v31 = vld [vmem:[%s3153_s0 + $0x40] sm:$0xff] }
   0x4   :  { %v145_v14 = vadd.f32 %v1422_v4, %v1420_v3  ;;  %v139_v15 = vadd.f32 %v44_v6, %v1424_v5  ;;  %491 = vmatprep.mubr.f32.mxu0 %v44_v6  ;;  %748 = vmatprep.mubr.f32.mxu1 %v44_v6  ;;  %v1446_v16 = vunpack.c.l.bf16 %v16_v8  ;;  %v1448_v17 = vunpack.c.h.bf16 %v16_v8  ;;  %v20_v30 = vld [vmem:[%s3153_s0 + $0x48] sm:$0xff]  ;;  %v22_v38 = vld [vmem:[%s3153_s0 + $0x58] sm:$0xff]  ;;  %v21_v39 = vld [vmem:[%s3153_s0 + $0x50] sm:$0xff] }
   0x5   :  { %v148_v18 = vadd.f32 %v1434_v10, %v1432_v9  ;;  %v142_v19 = vadd.f32 %v1438_v12, %v1436_v11  ;;  %v1454_v20 = vunpack.c.l.bf16 %v15_v13  ;;  %v1456_v21 = vunpack.c.h.bf16 %v15_v13  ;;  %v24_v46 = vld [vmem:[%s3153_s0 + $0x68] sm:$0xff]  ;;  %v23_v47 = vld [vmem:[%s3153_s0 + $0x60] sm:$0xff]  ;;  %v26_v54 = vld [vmem:[%s3153_s0 + $0x78] sm:$0xff] }
   0x6   :  { %3373 = vst [vmem:[#allocation2_spill] sm:$0xff] %v1446_v16  ;;  %3374 = vst [vmem:[#allocation3_spill] sm:$0xff] %v1448_v17  ;;  %146 = vadd.xlane.f32.xlu1 %v145_v14  ;;  %140 = vadd.xlane.f32.xlu0 %v139_v15  ;;  %v154_v24 = vadd.f32 %v1448_v17, %v1446_v16  ;;  %v1466_v25 = vunpack.c.l.bf16 %v18_v22  ;;  %v1470_v27 = vunpack.c.h.bf16 %v18_v22  ;;  %v1472_v28 = vunpack.c.l.bf16 %v17_v23  ;;  %v25_v55 = vld [vmem:[%s3153_s0 + $0x70] sm:$0xff]  ;;  %v28_v62 = vld [vmem:[%s3153_s0 + $0x88] sm:$0xff] }
   0x7   :  { %3375 = vst [vmem:[#allocation4_spill] sm:$0xff] %v1454_v20  ;;  %3376 = vst [vmem:[#allocation5_spill] sm:$0xff] %v1456_v21  ;;  %v151_v26 = vadd.f32 %v1456_v21, %v1454_v20  ;;  %v1474_v29 = vunpack.c.h.bf16 %v17_v23  ;;  %v1482_v32 = vunpack.c.l.bf16 %v20_v30  ;;  %v1484_v33 = vunpack.c.h.bf16 %v20_v30  ;;  %v27_v63 = vld [vmem:[%s3153_s0 + $0x80] sm:$0xff]  ;;  %v30_v13 = vld [vmem:[%s3153_s0 + $0x98] sm:$0xff] }
   0x8   :  { %3377 = vst [vmem:[#allocation6_spill] sm:$0xff] %v1466_v25  ;;  %3378 = vst [vmem:[#allocation7_spill] sm:$0xff] %v1470_v27  ;;  %v160_v34 = vadd.f32 %v1470_v27, %v1466_v25  ;;  %v1490_v36 = vunpack.c.l.bf16 %v19_v31  ;;  %v1492_v37 = vunpack.c.h.bf16 %v19_v31  ;;  %v1502_v41 = vunpack.c.l.bf16 %v22_v38  ;;  %v29_v14 = vld [vmem:[%s3153_s0 + $0x90] sm:$0xff]  ;;  %v31_v30 = vld [vmem:[%s3153_s0 + $0xa0] sm:$0xff] }
   0x9   :  { %3379 = vst [vmem:[#allocation8_spill] sm:$0xff] %v1472_v28  ;;  %3380 = vst [vmem:[#allocation9_spill] sm:$0xff] %v1474_v29  ;;  %v157_v35 = vadd.f32 %v1474_v29, %v1472_v28  ;;  %v166_v40 = vadd.f32 %v1484_v33, %v1482_v32  ;;  %v1506_v43 = vunpack.c.h.bf16 %v22_v38  ;;  %v1508_v44 = vunpack.c.l.bf16 %v21_v39  ;;  %v135_v20 = vld [vmem:[%s3154_s1 + $0xe0] sm:$0xff] }
   0xa   :  { %149 = vadd.xlane.f32.xlu1 %v148_v18  ;;  %143 = vadd.xlane.f32.xlu0 %v142_v19  ;;  %3381 = vst [vmem:[#allocation10_spill] sm:$0xff] %v1482_v32  ;;  %3382 = vst [vmem:[#allocation11_spill] sm:$0xff] %v1484_v33  ;;  %v163_v42 = vadd.f32 %v1492_v37, %v1490_v36  ;;  %v1510_v45 = vunpack.c.h.bf16 %v21_v39  ;;  %v1518_v48 = vunpack.c.l.bf16 %v24_v46  ;;  %v1520_v49 = vunpack.c.h.bf16 %v24_v46  ;;  %v33_v46 = vld [vmem:[%s3153_s0 + $0xb0] sm:$0xff] }
   0xb   :  { %3383 = vst [vmem:[#allocation12_spill] sm:$0xff] %v1490_v36  ;;  %3384 = vst [vmem:[#allocation13_spill] sm:$0xff] %v1492_v37  ;;  %v172_v50 = vadd.f32 %v1506_v43, %v1502_v41  ;;  %v1526_v52 = vunpack.c.l.bf16 %v23_v47  ;;  %v1528_v53 = vunpack.c.h.bf16 %v23_v47  ;;  %v1538_v57 = vunpack.c.l.bf16 %v26_v54 }
   0xc   :  { %3385 = vst [vmem:[#allocation14_spill] sm:$0xff] %v1502_v41  ;;  %3386 = vst [vmem:[#allocation15_spill] sm:$0xff] %v1506_v43  ;;  %v169_v51 = vadd.f32 %v1510_v45, %v1508_v44  ;;  %v178_v56 = vadd.f32 %v1520_v49, %v1518_v48  ;;  %v1542_v59 = vunpack.c.h.bf16 %v26_v54  ;;  %v1544_v60 = vunpack.c.l.bf16 %v25_v55  ;;  %v125_v43 = vld [vmem:[%s3154_s1 + $0x90] sm:$0xff] }
   0xd   :  { %3387 = vst [vmem:[#allocation16_spill] sm:$0xff] %v1508_v44  ;;  %3388 = vst [vmem:[#allocation17_spill] sm:$0xff] %v1510_v45  ;;  %v175_v58 = vadd.f32 %v1528_v53, %v1526_v52  ;;  %v1546_v61 = vunpack.c.h.bf16 %v25_v55  ;;  %v1554_v0 = vunpack.c.l.bf16 %v28_v62  ;;  %v1556_v1 = vunpack.c.h.bf16 %v28_v62  ;;  %v36_v62 = vld [vmem:[%s3153_s0 + $0xc8] sm:$0xff]  ;;  %v127_v45 = vld [vmem:[%s3154_s1 + $0xa0] sm:$0xff] }
   0xe   :  { %155 = vadd.xlane.f32.xlu1 %v154_v24  ;;  %152 = vadd.xlane.f32.xlu0 %v151_v26  ;;  %3389 = vst [vmem:[#allocation18_spill] sm:$0xff] %v1518_v48  ;;  %3390 = vst [vmem:[#allocation19_spill] sm:$0xff] %v1520_v49  ;;  %v184_v2 = vadd.f32 %v1542_v59, %v1538_v57  ;;  %v1562_v7 = vunpack.c.l.bf16 %v27_v63  ;;  %v1564_v8 = vunpack.c.h.bf16 %v27_v63  ;;  %v1574_v18 = vunpack.c.l.bf16 %v30_v13  ;;  %v32_v26 = vld [vmem:[%s3153_s0 + $0xa8] sm:$0xff]  ;;  %v35_v63 = vld [vmem:[%s3153_s0 + $0xc0] sm:$0xff] }
   0xf   :  { %3391 = vst [vmem:[#allocation20_spill] sm:$0xff] %v1526_v52  ;;  %3392 = vst [vmem:[#allocation21_spill] sm:$0xff] %v1528_v53  ;;  %v181_v6 = vadd.f32 %v1546_v61, %v1544_v60  ;;  %v190_v15 = vadd.f32 %v1556_v1, %v1554_v0  ;;  %v1578_v22 = vunpack.c.h.bf16 %v30_v13  ;;  %v1580_v23 = vunpack.c.l.bf16 %v29_v14  ;;  %v123_v52 = vld [vmem:[%s3154_s1 + $0x80] sm:$0xff] }
  0x10   :  { %3393 = vst [vmem:[#allocation22_spill] sm:$0xff] %v1538_v57  ;;  %3394 = vst [vmem:[#allocation23_spill] sm:$0xff] %v1542_v59  ;;  %v187_v19 = vadd.f32 %v1564_v8, %v1562_v7  ;;  %v1582_v24 = vunpack.c.h.bf16 %v29_v14  ;;  %v1590_v31 = vunpack.c.l.bf16 %v32_v26  ;;  %v1598_v39 = vunpack.c.l.bf16 %v31_v30 }
  0x11   :  { %3395 = vst [vmem:[#allocation24_spill] sm:$0xff] %v1544_v60  ;;  %3396 = vst [vmem:[#allocation25_spill] sm:$0xff] %v1546_v61  ;;  %v117_v60 = vld [vmem:[%s3154_s1 + $0x50] sm:$0xff] }
  0x12   :  { %161 = vadd.xlane.f32.xlu1 %v160_v34  ;;  %158 = vadd.xlane.f32.xlu0 %v157_v35  ;;  %3397 = vst [vmem:[#allocation26_spill] sm:$0xff] %v1554_v0  ;;  %3398 = vst [vmem:[#allocation27_spill] sm:$0xff] %v1556_v1  ;;  %v1592_v34 = vunpack.c.h.bf16 %v32_v26  ;;  %v196_v35 = vadd.f32 %v1578_v22, %v1574_v18  ;;  %v193_v38 = vadd.f32 %v1582_v24, %v1580_v23  ;;  %v38_v26 = vld [vmem:[%s3153_s0 + $0xd8] sm:$0xff]  ;;  %v3440_v0 = vmov 0.0|0.0  }
  0x13   :  { %3399 = vst [vmem:[#allocation28_spill] sm:$0xff] %v1562_v7  ;;  %3400 = vst [vmem:[#allocation29_spill] sm:$0xff] %v1564_v8  ;;  %v113_v7 = vld [vmem:[%s3154_s1 + $0x30] sm:$0xff] }
  0x14   :  { %3401 = vst [vmem:[#allocation30_spill] sm:$0xff] %v1574_v18  ;;  %3402 = vst [vmem:[#allocation31_spill] sm:$0xff] %v1578_v22  ;;  %v202_v47 = vadd.f32 %v1592_v34, %v1590_v31 }
  0x15   :  { %3403 = vst [vmem:[#allocation32_spill] sm:$0xff] %v1580_v23  ;;  %3404 = vst [vmem:[#allocation33_spill] sm:$0xff] %v1582_v24 }
  0x16   :  { %167 = vadd.xlane.f32.xlu1 %v166_v40  ;;  %164 = vadd.xlane.f32.xlu0 %v163_v42  ;;  %3405 = vst [vmem:[#allocation34_spill] sm:$0xff] %v1590_v31  ;;  %3406 = vst [vmem:[#allocation35_spill] sm:$0xff] %v1592_v34  ;;  %v1600_v40 = vunpack.c.h.bf16 %v31_v30  ;;  %v34_v42 = vld [vmem:[%s3153_s0 + $0xb8] sm:$0xff]  ;;  %v37_v30 = vld [vmem:[%s3153_s0 + $0xd0] sm:$0xff] }
  0x17   :  { %3407 = vst [vmem:[#allocation36_spill] sm:$0xff] %v1598_v39  ;;  %v1616_v55 = vunpack.c.h.bf16 %v34_v42  ;;  %v110_v31 = vld [vmem:[%s3154_s1 + $0x18] sm:$0xff] }
  0x18   :  { %3408 = vst [vmem:[#allocation37_spill] sm:$0xff] %v1600_v40  ;;  %v199_v54 = vadd.f32 %v1600_v40, %v1598_v39 }
  0x19   :  { %3410 = vst [vmem:[#allocation39_spill] sm:$0xff] %v1616_v55 }
  0x1a   :  { %173 = vadd.xlane.f32.xlu1 %v172_v50  ;;  %170 = vadd.xlane.f32.xlu0 %v169_v51  ;;  %v1610_v50 = vunpack.c.l.bf16 %v34_v42  ;;  %v3156_v51 = vmov 0.0|0.0  }
  0x1b   :  { %1234 = vmatprep.subr.bf16.mxu0 %v3156_v51  ;;  %1282 = vmatprep.subr.bf16.mxu1 %v3156_v51 }
  0x1c   :  { %3409 = vst [vmem:[#allocation38_spill] sm:$0xff] %v1610_v50  ;;  %v208_v13 = vadd.f32 %v1616_v55, %v1610_v50 }
  0x1e   :  { %179 = vadd.xlane.f32.xlu1 %v178_v56  ;;  %176 = vadd.xlane.f32.xlu0 %v175_v58  ;;  %v1618_v56 = vunpack.c.l.bf16 %v33_v46  ;;  %v1620_v58 = vunpack.c.h.bf16 %v33_v46  ;;  %v1652_v46 = vunpack.c.h.bf16 %v38_v26 }
  0x20   :  { %3411 = vst [vmem:[#allocation40_spill] sm:$0xff] %v1618_v56  ;;  %3412 = vst [vmem:[#allocation41_spill] sm:$0xff] %v1620_v58  ;;  %v205_v14 = vadd.f32 %v1620_v58, %v1618_v56 }
  0x21   :  { %3418 = vst [vmem:[#allocation47_spill] sm:$0xff] %v1652_v46 }
  0x22   :  { %185 = vadd.xlane.f32.xlu1 %v184_v2  ;;  %182 = vadd.xlane.f32.xlu0 %v181_v6  ;;  %v1628_v2 = vunpack.c.l.bf16 %v36_v62  ;;  %v1630_v6 = vunpack.c.h.bf16 %v36_v62  ;;  %v40_v62 = vld [vmem:[%s3153_s0 + $0xe8] sm:$0xff] }
  0x23   :  { %v1664_v51 = vunpack.c.l.bf16 %v40_v62 }
  0x24   :  { %3413 = vst [vmem:[#allocation42_spill] sm:$0xff] %v1628_v2  ;;  %3414 = vst [vmem:[#allocation43_spill] sm:$0xff] %v1630_v6 }
  0x25   :  { %3421 = vst [vmem:[#allocation50_spill] sm:$0xff] %v1664_v51 }
  0x26   :  { %191 = vadd.xlane.f32.xlu1 %v190_v15  ;;  %188 = vadd.xlane.f32.xlu0 %v187_v19  ;;  %v1636_v15 = vunpack.c.l.bf16 %v35_v63  ;;  %v1638_v19 = vunpack.c.h.bf16 %v35_v63  ;;  %v39_v63 = vld [vmem:[%s3153_s0 + $0xe0] sm:$0xff] }
  0x28   :  { %3415 = vst [vmem:[#allocation44_spill] sm:$0xff] %v1636_v15  ;;  %3416 = vst [vmem:[#allocation45_spill] sm:$0xff] %v1638_v19  ;;  %v211_v42 = vadd.f32 %v1638_v19, %v1636_v15  ;;  %v107_v15 = vld [vmem:[%s3154_s1] sm:$0xff]  ;;  %v108_v19 = vld [vmem:[%s3154_s1 + $0x8] sm:$0xff] }
  0x2a   :  { %197 = vadd.xlane.f32.xlu1 %v196_v35  ;;  %194 = vadd.xlane.f32.xlu0 %v193_v38  ;;  %v214_v35 = vadd.f32 %v1630_v6, %v1628_v2  ;;  %v1648_v38 = vunpack.c.l.bf16 %v38_v26  ;;  %v1674_v2 = vunpack.c.h.bf16 %v39_v63  ;;  %v42_v6 = vld [vmem:[%s3153_s0 + $0xf8] sm:$0xff] }
  0x2c   :  { %3417 = vst [vmem:[#allocation46_spill] sm:$0xff] %v1648_v38  ;;  %3424 = vst [vmem:[#allocation53_spill] sm:$0xff] %v1674_v2 }
  0x2e   :  { %203 = vadd.xlane.f32.xlu1 %v202_v47  ;;  %200 = vadd.xlane.f32.xlu0 %v199_v54  ;;  %v1654_v47 = vunpack.c.l.bf16 %v37_v30  ;;  %v1656_v54 = vunpack.c.h.bf16 %v37_v30  ;;  %v1672_v30 = vunpack.c.l.bf16 %v39_v63  ;;  %v1688_v63 = vunpack.c.h.bf16 %v42_v6 }
  0x30   :  { %3419 = vst [vmem:[#allocation48_spill] sm:$0xff] %v1654_v47  ;;  %3420 = vst [vmem:[#allocation49_spill] sm:$0xff] %v1656_v54  ;;  %v217_v26 = vadd.f32 %v1656_v54, %v1654_v47 }
  0x31   :  { %3423 = vst [vmem:[#allocation52_spill] sm:$0xff] %v1672_v30  ;;  %3426 = vst [vmem:[#allocation55_spill] sm:$0xff] %v1688_v63 }
  0x32   :  { %209 = vadd.xlane.f32.xlu1 %v208_v13  ;;  %206 = vadd.xlane.f32.xlu0 %v205_v14  ;;  %v1666_v13 = vunpack.c.h.bf16 %v40_v62  ;;  %v220_v14 = vadd.f32 %v1652_v46, %v1648_v38  ;;  %v41_v62 = vld [vmem:[%s3153_s0 + $0xf0] sm:$0xff]  ;;  %v223_v38 = vadd.f32 %v1674_v2, %v1672_v30 }
  0x33   :  { %v1690_v46 = vunpack.c.l.bf16 %v41_v62  ;;  %v1692_v47 = vunpack.c.h.bf16 %v41_v62 }
  0x34   :  { %3422 = vst [vmem:[#allocation51_spill] sm:$0xff] %v1666_v13 }
  0x35   :  { %3427 = vst [vmem:[#allocation56_spill] sm:$0xff] %v1690_v46  ;;  %3428 = vst [vmem:[#allocation57_spill] sm:$0xff] %v1692_v47 }
  0x36   :  { %215 = vadd.xlane.f32.xlu1 %v214_v35  ;;  %212 = vadd.xlane.f32.xlu0 %v211_v42  ;;  %v226_v35 = vadd.f32 %v1666_v13, %v1664_v51  ;;  %v1684_v42 = vunpack.c.l.bf16 %v42_v6  ;;  %v229_v51 = vadd.f32 %v1692_v47, %v1690_v46 }
  0x38   :  { %3425 = vst [vmem:[#allocation54_spill] sm:$0xff] %v1684_v42  ;;  %v232_v54 = vadd.f32 %v1688_v63, %v1684_v42 }
  0x3a   :  { %221 = vadd.xlane.f32.xlu1 %v220_v14  ;;  %218 = vadd.xlane.f32.xlu0 %v217_v26 }
  0x3e   :  { %227 = vadd.xlane.f32.xlu1 %v226_v35  ;;  %224 = vadd.xlane.f32.xlu0 %v223_v38 }
  0x42   :  { %233 = vadd.xlane.f32.xlu1 %v232_v54  ;;  %230 = vadd.xlane.f32.xlu0 %v229_v51 }
  0x93   :  { %v147_v14 = vpop.xlane.xlu1 %146  ;;  %v141_v26 = vpop.xlane.xlu0 %140 }
  0x94   :  { %v1698_v13 = vadd.f32 1.0, %v147_v14  ;;  %v235_v6 = vadd.f32 1.0, %v141_v26 }
  0x96   :  { %1331 = vrsqrt.f32 %v235_v6  ;;  %vm267_vm0 = vcmp.gt.f32.partialorder %v235_v6, 0.0  ;;  %vm269_vm1 = vcmp.gt.f32.partialorder %v1698_v13, 0.0  ;;  %vm943_vm2 = vcmp.eq.f32.partialorder %v235_v6, inf }
  0x97   :  { %v150_v30 = vpop.xlane.xlu1 %149  ;;  %v144_v2 = vpop.xlane.xlu0 %143  ;;  %1333 = vrsqrt.f32 %v1698_v13  ;;  %vm945_vm3 = vcmp.eq.f32.partialorder %v235_v6, 0.0  ;;  %vm957_vm4 = vcmp.eq.f32.partialorder %v1698_v13, inf  ;;  %vm959_vm9 = vcmp.eq.f32.partialorder %v1698_v13, 0.0 }
  0x98   :  { %v1700_v62 = vadd.f32 1.0, %v150_v30  ;;  %v1702_v35 = vadd.f32 1.0, %v144_v2 }
  0x9a   :  { %1335 = vrsqrt.f32 %v1702_v35  ;;  %vm268_vm5 = vcmp.gt.f32.partialorder %v1702_v35, 0.0  ;;  %vm270_vm6 = vcmp.gt.f32.partialorder %v1700_v62, 0.0  ;;  %vm950_vm7 = vcmp.eq.f32.partialorder %v1702_v35, inf }
  0x9b   :  { %v156_v38 = vpop.xlane.xlu1 %155  ;;  %v153_v42 = vpop.xlane.xlu0 %152  ;;  %1337 = vrsqrt.f32 %v1700_v62  ;;  %vm952_vm8 = vcmp.eq.f32.partialorder %v1702_v35, 0.0  ;;  %v953_v55 = vand.u32 2147483648, %v1702_v35  ;;  %vm964_vm12 = vcmp.eq.f32.partialorder %v1700_v62, inf }
  0x9c   :  { %v1707_v51 = vadd.f32 1.0, %v156_v38  ;;  %v1709_v54 = vadd.f32 1.0, %v153_v42  ;;  %v946_v38 = vand.u32 2147483648, %v235_v6  ;;  %vm966_vm14 = vcmp.eq.f32.partialorder %v1700_v62, 0.0 }
  0x9e   :  { %1339 = vrsqrt.f32 %v1709_v54  ;;  %vm271_vm10 = vcmp.gt.f32.partialorder %v1709_v54, 0.0  ;;  %vm272_vm11 = vcmp.gt.f32.partialorder %v1707_v51, 0.0  ;;  %vm971_vm13 = vcmp.eq.f32.partialorder %v1709_v54, inf }
  0x9f   :  { %v162_v14 = vpop.xlane.xlu1 %161  ;;  %v159_v26 = vpop.xlane.xlu0 %158  ;;  %1341 = vrsqrt.f32 %v1707_v51  ;;  %vm973_vm15 = vcmp.eq.f32.partialorder %v1709_v54, 0.0 }
  0xa0   :  { %v1332_v2 = vpop.eup %1331  ;;  %v1713_v30 = vadd.f32 1.0, %v162_v14  ;;  %v1715_v63 = vadd.f32 1.0, %v159_v26 }
  0xa1   :  { %v942_v46 = vmul.f32 %v1332_v2, %v235_v6  ;;  %v1334_v42 = vpop.eup %1333  ;;  %v1730_v50 = vsel %vm267_vm0, %v1332_v2, 0.0 }
  0xa2   :  { %3429 = vst [vmem:[#allocation58_spill] sm:$0xff] %v1730_v50  ;;  %1343 = vrsqrt.f32 %v1715_v63  ;;  %v956_v40 = vmul.f32 %v1334_v42, %v1698_v13  ;;  %v1755_v18 = vmul.f32 %v1730_v50, %v107_v15  ;;  %v1765_v23 = vsel %vm269_vm1, %v1334_v42, 0.0 }
  0xa3   :  { %v168_v47 = vpop.xlane.xlu1 %167  ;;  %v165_v26 = vpop.xlane.xlu0 %164  ;;  %1345 = vrsqrt.f32 %v1713_v30  ;;  %v944_v2 = vsel %vm943_vm2, %v235_v6, %v942_v46  ;;  %v109_v46 = vld [vmem:[%s3154_s1 + $0x10] sm:$0xff]  ;;  %3434 = vst [vmem:[#allocation63_spill] sm:$0xff] %v1765_v23  ;;  %vm273_vm0 = vcmp.gt.f32.partialorder %v1715_v63, 0.0  ;;  %vm274_vm1 = vcmp.gt.f32.partialorder %v1713_v30, 0.0 }
  0xa4   :  { %v1336_v14 = vpop.eup %1335  ;;  %v1735_v56 = vadd.f32 1.0, %v168_v47  ;;  %v1737_v58 = vadd.f32 1.0, %v165_v26  ;;  %v1750_v47 = vsel %vm945_vm3, %v946_v38, %v944_v2  ;;  %3432 = vst [vmem:[#allocation61_spill] sm:$0xff] %v1755_v18  ;;  %v1791_v50 = vmul.f32 %v1765_v23, %v109_v46 }
  0xa5   :  { %v1338_v34 = vpop.eup %1337  ;;  %v1747_v39 = vsel %vm268_vm5, %v1336_v14, 0.0  ;;  %3431 = vst [vmem:[#allocation60_spill] sm:$0xff] %v1750_v47  ;;  %v949_v26 = vmul.f32 %v1336_v14, %v1702_v35  ;;  %vm980_vm5 = vcmp.eq.f32.partialorder %v1707_v51, 0.0 }
  0xa6   :  { %3430 = vst [vmem:[#allocation59_spill] sm:$0xff] %v1747_v39  ;;  %v1758_v22 = vmul.f32 %v1747_v39, %v108_v19  ;;  %v1769_v6 = vsel %vm270_vm6, %v1338_v34, 0.0  ;;  %1347 = vrsqrt.f32 %v1737_v58  ;;  %v111_v39 = vld [vmem:[%s3154_s1 + $0x20] sm:$0xff]  ;;  %3437 = vst [vmem:[#allocation66_spill] sm:$0xff] %v1791_v50  ;;  %vm275_vm2 = vcmp.gt.f32.partialorder %v1737_v58, 0.0 }
  0xa7   :  { %3435 = vst [vmem:[#allocation64_spill] sm:$0xff] %v1769_v6  ;;  %v174_v38 = vpop.xlane.xlu1 %173  ;;  %v171_v14 = vpop.xlane.xlu0 %170  ;;  %v1772_v15 = vmul.f32 %v1769_v6, %v110_v31  ;;  %v112_v31 = vld [vmem:[%s3154_s1 + $0x28] sm:$0xff]  ;;  %1349 = vrsqrt.f32 %v1735_v56  ;;  %vm276_vm3 = vcmp.gt.f32.partialorder %v1735_v56, 0.0 }
  0xa8   :  { %3433 = vst [vmem:[#allocation62_spill] sm:$0xff] %v1758_v22  ;;  %v1340_v19 = vpop.eup %1339  ;;  %v1777_v2 = vadd.f32 1.0, %v174_v38  ;;  %v1779_v42 = vadd.f32 1.0, %v171_v14  ;;  %v1235_v47 = vpack.c.bf16 %v1758_v22, %v1755_v18  ;;  %v951_v14 = vsel %vm950_vm7, %v1702_v35, %v949_v26 }
  0xa9   :  { %3436 = vst [vmem:[#allocation65_spill] sm:$0xff] %v1772_v15  ;;  %v1342_v6 = vpop.eup %1341  ;;  %v1793_v38 = vsel %vm271_vm10, %v1340_v19, 0.0  ;;  %v958_v22 = vsel %vm957_vm4, %v1698_v13, %v956_v40  ;;  %v1238_v26 = vpack.c.bf16 %v1772_v15, %v1791_v50  ;;  %v1826_v15 = vsel %vm952_vm8, %v953_v55, %v951_v14 }
  0xaa   :  { %3438 = vst [vmem:[#allocation67_spill] sm:$0xff] %v1793_v38  ;;  %1236 = vmatpush1.bf16.msra.mxu0 %v1235_v47  ;;  %v1801_v18 = vsel %vm272_vm11, %v1342_v6, 0.0  ;;  %v1810_v1 = vmul.f32 %v1793_v38, %v111_v39  ;;  %1351 = vrsqrt.f32 %v1779_v42  ;;  %3443 = vst [vmem:[#allocation71_spill] sm:$0xff] %v1826_v15  ;;  %v963_v55 = vmul.f32 %v1338_v34, %v1700_v62 }
  0xab   :  { %3439 = vst [vmem:[#allocation68_spill] sm:$0xff] %v1801_v18  ;;  %v180_v46 = vpop.xlane.xlu1 %179  ;;  %v177_v23 = vpop.xlane.xlu0 %176  ;;  %1237 = vmatprep.subr.bf16.mxu0 %v3440_v0  ;;  %v1813_v40 = vmul.f32 %v1801_v18, %v112_v31  ;;  %1353 = vrsqrt.f32 %v1777_v2  ;;  %v3444_v31 = vand.u32 2147483648, %v1698_v13  ;;  %v970_v35 = vmul.f32 %v1340_v19, %v1709_v54 }
  0xac   :  { %3441 = vst [vmem:[#allocation69_spill] sm:$0xff] %v1810_v1  ;;  %v1816_v47 = vadd.f32 1.0, %v180_v46  ;;  %v1818_v24 = vadd.f32 1.0, %v177_v23  ;;  %v1344_v39 = vpop.eup %1343  ;;  %v114_v23 = vld [vmem:[%s3154_s1 + $0x38] sm:$0xff]  ;;  %v974_v18 = vand.u32 2147483648, %v1709_v54  ;;  %vm978_vm4 = vcmp.eq.f32.partialorder %v1707_v51, inf }
  0xad   :  { %3442 = vst [vmem:[#allocation70_spill] sm:$0xff] %v1813_v40  ;;  %v1838_v46 = vsel %vm959_vm9, %v3444_v31, %v958_v22  ;;  %v1842_v14 = vpop.eup %1345  ;;  %v1845_v15 = vsel %vm273_vm0, %v1344_v39, 0.0  ;;  %vm277_vm6 = vcmp.gt.f32.partialorder %v1779_v42, 0.0  ;;  %vm278_vm7 = vcmp.gt.f32.partialorder %v1777_v2, 0.0 }
  0xae   :  { %3445 = vst [vmem:[#allocation72_spill] sm:$0xff] %v1838_v46  ;;  %1239 = vmatpush1.bf16.msra.mxu0 %v1238_v26  ;;  %3446 = vst [vmem:[#allocation73_spill] sm:$0xff] %v1845_v15  ;;  %1355 = vrsqrt.f32 %v1818_v24  ;;  %v1851_v22 = vsel %vm274_vm1, %v1842_v14, 0.0  ;;  %v1854_v34 = vmul.f32 %v1845_v15, %v113_v7  ;;  %v1241_v26 = vpack.c.bf16 %v1813_v40, %v1810_v1  ;;  %v115_v46 = vld [vmem:[%s3154_s1 + $0x40] sm:$0xff]  ;;  %v116_v15 = vld [vmem:[%s3154_s1 + $0x48] sm:$0xff] }
  0xaf   :  { %v186_v38 = vpop.xlane.xlu1 %185  ;;  %v183_v50 = vpop.xlane.xlu0 %182  ;;  %1240 = vmatprep.subr.bf16.mxu0 %v3440_v0  ;;  %3447 = vst [vmem:[#allocation74_spill] sm:$0xff] %v1851_v22  ;;  %1357 = vrsqrt.f32 %v1816_v47  ;;  %v1865_v31 = vmul.f32 %v1851_v22, %v114_v23  ;;  %v977_v23 = vmul.f32 %v1342_v6, %v1707_v51  ;;  %v1883_v22 = vmul.f32 %v1344_v39, %v1715_v63 }
  0xb0   :  { %3448 = vst [vmem:[#allocation75_spill] sm:$0xff] %v1854_v34  ;;  %v1858_v13 = vadd.f32 1.0, %v186_v38  ;;  %v1860_v19 = vadd.f32 1.0, %v183_v50  ;;  %v1870_v7 = vpop.eup %1347  ;;  %v965_v50 = vsel %vm964_vm12, %v1700_v62, %v963_v55  ;;  %v972_v38 = vsel %vm971_vm13, %v1709_v54, %v970_v35 }
  0xb1   :  { %3449 = vst [vmem:[#allocation76_spill] sm:$0xff] %v1865_v31  ;;  %v1885_v40 = vpop.eup %1349  ;;  %v1891_v1 = vsel %vm275_vm2, %v1870_v7, 0.0  ;;  %v1244_v6 = vpack.c.bf16 %v1865_v31, %v1854_v34  ;;  %vm279_vm8 = vcmp.gt.f32.partialorder %v1818_v24, 0.0  ;;  %vm280_vm9 = vcmp.gt.f32.partialorder %v1816_v47, 0.0 }
  0xb2   :  { %1242 = vmatpush1.bf16.msra.mxu0 %v1241_v26  ;;  %3450 = vst [vmem:[#allocation77_spill] sm:$0xff] %v1891_v1  ;;  %v1899_v39 = vsel %vm276_vm3, %v1885_v40, 0.0  ;;  %v1902_v26 = vmul.f32 %v1891_v1, %v115_v46  ;;  %1359 = vrsqrt.f32 %v1860_v19  ;;  %v118_v46 = vld [vmem:[%s3154_s1 + $0x58] sm:$0xff]  ;;  %vm985_vm10 = vcmp.eq.f32.partialorder %v1715_v63, inf }
  0xb3   :  { %v192_v55 = vpop.xlane.xlu1 %191  ;;  %v189_v35 = vpop.xlane.xlu0 %188  ;;  %1243 = vmatprep.subr.bf16.mxu0 %v3440_v0  ;;  %3451 = vst [vmem:[#allocation78_spill] sm:$0xff] %v1899_v39  ;;  %v1910_v59 = vmul.f32 %v1899_v39, %v116_v15  ;;  %1361 = vrsqrt.f32 %v1858_v13  ;;  %v979_v39 = vsel %vm978_vm4, %v1707_v51, %v977_v23  ;;  %vm281_vm11 = vcmp.gt.f32.partialorder %v1860_v19, 0.0 }
  0xb4   :  { %3452 = vst [vmem:[#allocation79_spill] sm:$0xff] %v1902_v26  ;;  %v1905_v8 = vadd.f32 1.0, %v192_v55  ;;  %v1907_v57 = vadd.f32 1.0, %v189_v35  ;;  %v1916_v31 = vpop.eup %1351  ;;  %v3454_v55 = vand.u32 2147483648, %v1700_v62  ;;  %v1930_v35 = vsel %vm973_vm15, %v974_v18, %v972_v38 }
  0xb5   :  { %3453 = vst [vmem:[#allocation80_spill] sm:$0xff] %v1910_v59  ;;  %3456 = vst [vmem:[#allocation82_spill] sm:$0xff] %v1930_v35  ;;  %v1935_v1 = vpop.eup %1353  ;;  %v1939_v34 = vsel %vm277_vm6, %v1916_v31, 0.0  ;;  %v981_v62 = vand.u32 2147483648, %v1707_v51  ;;  %v1247_v18 = vpack.c.bf16 %v1910_v59, %v1902_v26  ;;  %vm282_vm12 = vcmp.gt.f32.partialorder %v1858_v13, 0.0 }
  0xb6   :  { %v1926_v15 = vsel %vm966_vm14, %v3454_v55, %v965_v50  ;;  %1245 = vmatpush1.bf16.msra.mxu0 %v1244_v6  ;;  %3457 = vst [vmem:[#allocation83_spill] sm:$0xff] %v1939_v34  ;;  %v1947_v38 = vsel %vm278_vm7, %v1935_v1, 0.0  ;;  %v1950_v23 = vmul.f32 %v1939_v34, %v117_v60  ;;  %v119_v6 = vld [vmem:[%s3154_s1 + $0x60] sm:$0xff]  ;;  %1363 = vrsqrt.f32 %v1907_v57  ;;  %v120_v60 = vld [vmem:[%s3154_s1 + $0x68] sm:$0xff] }
  0xb7   :  { %3455 = vst [vmem:[#allocation81_spill] sm:$0xff] %v1926_v15  ;;  %v198_v50 = vpop.xlane.xlu1 %197  ;;  %v195_v54 = vpop.xlane.xlu0 %194  ;;  %1246 = vmatprep.subr.bf16.mxu0 %v3440_v0  ;;  %3458 = vst [vmem:[#allocation84_spill] sm:$0xff] %v1947_v38  ;;  %v1963_v59 = vmul.f32 %v1947_v38, %v118_v46  ;;  %1365 = vrsqrt.f32 %v1905_v8  ;;  %vm987_vm13 = vcmp.eq.f32.partialorder %v1715_v63, 0.0  ;;  %vm283_vm14 = vcmp.gt.f32.partialorder %v1907_v57, 0.0 }
  0xb8   :  { %3459 = vst [vmem:[#allocation85_spill] sm:$0xff] %v1950_v23  ;;  %v1956_v55 = vpop.eup %1355  ;;  %v1958_v35 = vadd.f32 1.0, %v198_v50  ;;  %v1960_v15 = vadd.f32 1.0, %v195_v54  ;;  %v1979_v54 = vsel %vm980_vm5, %v981_v62, %v979_v39  ;;  %vm284_vm15 = vcmp.gt.f32.partialorder %v1905_v8, 0.0 }
  0xb9   :  { %3460 = vst [vmem:[#allocation86_spill] sm:$0xff] %v1963_v59  ;;  %v1969_v34 = vpop.eup %1357  ;;  %v1975_v50 = vsel %vm279_vm8, %v1956_v55, 0.0  ;;  %3462 = vst [vmem:[#allocation88_spill] sm:$0xff] %v1979_v54  ;;  %v1250_v62 = vpack.c.bf16 %v1963_v59, %v1950_v23  ;;  %vm992_vm0 = vcmp.eq.f32.partialorder %v1713_v30, inf  ;;  %vm994_vm4 = vcmp.eq.f32.partialorder %v1713_v30, 0.0 }
  0xba   :  { %3461 = vst [vmem:[#allocation87_spill] sm:$0xff] %v1975_v50  ;;  %1248 = vmatpush1.bf16.msra.mxu0 %v1247_v18  ;;  %v1982_v46 = vsel %vm280_vm9, %v1969_v34, 0.0  ;;  %v1985_v38 = vmul.f32 %v1975_v50, %v119_v6  ;;  %1367 = vrsqrt.f32 %v1960_v15  ;;  %v121_v18 = vld [vmem:[%s3154_s1 + $0x70] sm:$0xff]  ;;  %vm285_vm1 = vcmp.gt.f32.partialorder %v1960_v15, 0.0 }
  0xbb   :  { %3463 = vst [vmem:[#allocation89_spill] sm:$0xff] %v1982_v46  ;;  %v204_v26 = vpop.xlane.xlu1 %203  ;;  %v201_v61 = vpop.xlane.xlu0 %200  ;;  %1249 = vmatprep.subr.bf16.mxu0 %v3440_v0  ;;  %v1989_v48 = vmul.f32 %v1982_v46, %v120_v60  ;;  %1369 = vrsqrt.f32 %v1958_v35  ;;  %v122_v60 = vld [vmem:[%s3154_s1 + $0x78] sm:$0xff]  ;;  %vm286_vm2 = vcmp.gt.f32.partialorder %v1958_v35, 0.0  ;;  %vm999_vm6 = vcmp.eq.f32.partialorder %v1737_v58, inf }
  0xbc   :  { %3464 = vst [vmem:[#allocation90_spill] sm:$0xff] %v1985_v38  ;;  %v1993_v51 = vadd.f32 1.0, %v204_v26  ;;  %v1995_v39 = vadd.f32 1.0, %v201_v61  ;;  %v2003_v6 = vpop.eup %1359  ;;  %v986_v61 = vsel %vm985_vm10, %v1715_v63, %v1883_v22  ;;  %vm1001_vm9 = vcmp.eq.f32.partialorder %v1737_v58, 0.0 }
  0xbd   :  { %3465 = vst [vmem:[#allocation91_spill] sm:$0xff] %v1989_v48  ;;  %v2011_v26 = vpop.eup %1361  ;;  %v1253_v54 = vpack.c.bf16 %v1989_v48, %v1985_v38  ;;  %v2017_v46 = vsel %vm281_vm11, %v2003_v6, 0.0  ;;  %v1016_v29 = vand.u32 2147483648, %v1779_v42 }
  0xbe   :  { %1251 = vmatpush1.bf16.msra.mxu0 %v1250_v62  ;;  %3466 = vst [vmem:[#allocation92_spill] sm:$0xff] %v2017_v46  ;;  %1371 = vrsqrt.f32 %v1995_v39  ;;  %v2022_v23 = vsel %vm282_vm12, %v2011_v26, 0.0  ;;  %v2025_v22 = vmul.f32 %v2017_v46, %v121_v18  ;;  %v988_v62 = vand.u32 2147483648, %v1715_v63  ;;  %v124_v18 = vld [vmem:[%s3154_s1 + $0x88] sm:$0xff] }
  0xbf   :  { %v210_v50 = vpop.xlane.xlu1 %209  ;;  %v207_v59 = vpop.xlane.xlu0 %206  ;;  %1252 = vmatprep.subr.bf16.mxu0 %v3440_v0  ;;  %3467 = vst [vmem:[#allocation93_spill] sm:$0xff] %v2022_v23  ;;  %1373 = vrsqrt.f32 %v1993_v51  ;;  %v2034_v49 = vmul.f32 %v2022_v23, %v122_v60  ;;  %vm287_vm3 = vcmp.gt.f32.partialorder %v1995_v39, 0.0  ;;  %vm288_vm5 = vcmp.gt.f32.partialorder %v1993_v51, 0.0 }
  0xc0   :  { %3468 = vst [vmem:[#allocation94_spill] sm:$0xff] %v2025_v22  ;;  %v2029_v48 = vadd.f32 1.0, %v210_v50  ;;  %v2031_v38 = vadd.f32 1.0, %v207_v59  ;;  %v2040_v53 = vpop.eup %1363  ;;  %v2046_v50 = vsel %vm987_vm13, %v988_v62, %v986_v61  ;;  %v991_v59 = vmul.f32 %v1842_v14, %v1713_v30 }
  0xc1   :  { %3469 = vst [vmem:[#allocation95_spill] sm:$0xff] %v2034_v49  ;;  %3470 = vst [vmem:[#allocation96_spill] sm:$0xff] %v2046_v50  ;;  %v2050_v60 = vpop.eup %1365  ;;  %v2054_v63 = vsel %vm283_vm14, %v2040_v53, 0.0  ;;  %v1256_v61 = vpack.c.bf16 %v2034_v49, %v2025_v22  ;;  %vm1006_vm14 = vcmp.eq.f32.partialorder %v1735_v56, inf }
  0xc2   :  { %1254 = vmatpush1.bf16.msra.mxu0 %v1253_v54  ;;  %3471 = vst [vmem:[#allocation97_spill] sm:$0xff] %v2054_v63  ;;  %v2061_v62 = vsel %vm284_vm15, %v2050_v60, 0.0  ;;  %v2064_v14 = vmul.f32 %v2054_v63, %v123_v52  ;;  %1375 = vrsqrt.f32 %v2031_v38  ;;  %v126_v52 = vld [vmem:[%s3154_s1 + $0x98] sm:$0xff]  ;;  %v995_v63 = vand.u32 2147483648, %v1713_v30 }
  0xc3   :  { %v216_v23 = vpop.xlane.xlu1 %215  ;;  %v213_v46 = vpop.xlane.xlu0 %212  ;;  %1255 = vmatprep.subr.bf16.mxu0 %v3440_v0  ;;  %3472 = vst [vmem:[#allocation98_spill] sm:$0xff] %v2061_v62  ;;  %v2072_v41 = vmul.f32 %v2061_v62, %v124_v18  ;;  %1377 = vrsqrt.f32 %v2029_v48  ;;  %vm289_vm7 = vcmp.gt.f32.partialorder %v2031_v38, 0.0  ;;  %vm290_vm8 = vcmp.gt.f32.partialorder %v2029_v48, 0.0 }
  0xc4   :  { %3473 = vst [vmem:[#allocation99_spill] sm:$0xff] %v2064_v14  ;;  %v2067_v54 = vadd.f32 1.0, %v216_v23  ;;  %v2069_v50 = vadd.f32 1.0, %v213_v46  ;;  %v2078_v49 = vpop.eup %1367  ;;  %v993_v23 = vsel %vm992_vm0, %v1713_v30, %v991_v59  ;;  %v998_v46 = vmul.f32 %v1870_v7, %v1737_v58 }
  0xc5   :  { %3474 = vst [vmem:[#allocation100_spill] sm:$0xff] %v2072_v41  ;;  %v2090_v18 = vpop.eup %1369  ;;  %v2093_v62 = vsel %vm285_vm1, %v2078_v49, 0.0  ;;  %v1259_v59 = vpack.c.bf16 %v2072_v41, %v2064_v14  ;;  %vm1008_vm0 = vcmp.eq.f32.partialorder %v1735_v56, 0.0  ;;  %vm1013_vm1 = vcmp.eq.f32.partialorder %v1779_v42, inf }
  0xc6   :  { %1257 = vmatpush1.bf16.msra.mxu0 %v1256_v61  ;;  %3475 = vst [vmem:[#allocation101_spill] sm:$0xff] %v2093_v62  ;;  %v2102_v7 = vsel %vm286_vm2, %v2090_v18, 0.0  ;;  %v2105_v61 = vmul.f32 %v2093_v62, %v125_v43  ;;  %1379 = vrsqrt.f32 %v2069_v50  ;;  %v128_v43 = vld [vmem:[%s3154_s1 + $0xa8] sm:$0xff]  ;;  %vm291_vm10 = vcmp.gt.f32.partialorder %v2069_v50, 0.0 }
  0xc7   :  { %v222_v22 = vpop.xlane.xlu1 %221  ;;  %v219_v44 = vpop.xlane.xlu0 %218  ;;  %1258 = vmatprep.subr.bf16.mxu0 %v3440_v0  ;;  %3476 = vst [vmem:[#allocation102_spill] sm:$0xff] %v2102_v7  ;;  %v2118_v41 = vmul.f32 %v2102_v7, %v126_v52  ;;  %1381 = vrsqrt.f32 %v2067_v54  ;;  %vm292_vm11 = vcmp.gt.f32.partialorder %v2067_v54, 0.0  ;;  %vm1015_vm2 = vcmp.eq.f32.partialorder %v1779_v42, 0.0 }
  0xc8   :  { %3477 = vst [vmem:[#allocation103_spill] sm:$0xff] %v2105_v61  ;;  %v2111_v32 = vpop.eup %1371  ;;  %v2113_v33 = vadd.f32 1.0, %v222_v22  ;;  %v2115_v36 = vadd.f32 1.0, %v219_v44  ;;  %v2134_v44 = vsel %vm994_vm4, %v995_v63, %v993_v23 }
  0xc9   :  { %3478 = vst [vmem:[#allocation104_spill] sm:$0xff] %v2118_v41  ;;  %v2124_v62 = vpop.eup %1373  ;;  %v2130_v22 = vsel %vm287_vm3, %v2111_v32, 0.0  ;;  %3480 = vst [vmem:[#allocation106_spill] sm:$0xff] %v2134_v44  ;;  %v1262_v23 = vpack.c.bf16 %v2118_v41, %v2105_v61  ;;  %vm1020_vm3 = vcmp.eq.f32.partialorder %v1777_v2, inf }
  0xca   :  { %3479 = vst [vmem:[#allocation105_spill] sm:$0xff] %v2130_v22  ;;  %1260 = vmatpush1.bf16.msra.mxu0 %v1259_v59  ;;  %v2137_v52 = vsel %vm288_vm5, %v2124_v62, 0.0  ;;  %v2140_v7 = vmul.f32 %v2130_v22, %v127_v45  ;;  %1383 = vrsqrt.f32 %v2115_v36  ;;  %v129_v45 = vld [vmem:[%s3154_s1 + $0xb0] sm:$0xff]  ;;  %vm293_vm12 = vcmp.gt.f32.partialorder %v2115_v36, 0.0 }
  0xcb   :  { %3481 = vst [vmem:[#allocation107_spill] sm:$0xff] %v2137_v52  ;;  %v228_v14 = vpop.xlane.xlu1 %227  ;;  %v225_v37 = vpop.xlane.xlu0 %224  ;;  %1261 = vmatprep.subr.bf16.mxu0 %v3440_v0  ;;  %v2144_v25 = vmul.f32 %v2137_v52, %v128_v43  ;;  %1385 = vrsqrt.f32 %v2113_v33  ;;  %v130_v43 = vld [vmem:[%s3154_s1 + $0xb8] sm:$0xff]  ;;  %vm294_vm13 = vcmp.gt.f32.partialorder %v2113_v33, 0.0 }
  0xcc   :  { %3482 = vst [vmem:[#allocation108_spill] sm:$0xff] %v2140_v7  ;;  %v2148_v30 = vadd.f32 1.0, %v228_v14  ;;  %v2150_v63 = vadd.f32 1.0, %v225_v37  ;;  %v2158_v59 = vpop.eup %1375  ;;  %v1000_v37 = vsel %vm999_vm6, %v1737_v58, %v998_v46  ;;  %vm1022_vm6 = vcmp.eq.f32.partialorder %v1777_v2, 0.0 }
  0xcd   :  { %3483 = vst [vmem:[#allocation109_spill] sm:$0xff] %v2144_v25  ;;  %v2165_v14 = vpop.eup %1377  ;;  %v1265_v44 = vpack.c.bf16 %v2144_v25, %v2140_v7  ;;  %v2171_v52 = vsel %vm289_vm7, %v2158_v59, 0.0  ;;  %vm1027_vm7 = vcmp.eq.f32.partialorder %v1818_v24, inf }
  0xce   :  { %1263 = vmatpush1.bf16.msra.mxu0 %v1262_v23  ;;  %3484 = vst [vmem:[#allocation110_spill] sm:$0xff] %v2171_v52  ;;  %1387 = vrsqrt.f32 %v2150_v63  ;;  %v2176_v61 = vsel %vm290_vm8, %v2165_v14, 0.0  ;;  %v2179_v46 = vmul.f32 %v2171_v52, %v129_v45  ;;  %v1002_v23 = vand.u32 2147483648, %v1737_v58  ;;  %v131_v45 = vld [vmem:[%s3154_s1 + $0xc0] sm:$0xff]  ;;  %v132_v52 = vld [vmem:[%s3154_s1 + $0xc8] sm:$0xff] }
  0xcf   :  { %v234_v22 = vpop.xlane.xlu1 %233  ;;  %v231_v41 = vpop.xlane.xlu0 %230  ;;  %1264 = vmatprep.subr.bf16.mxu0 %v3440_v0  ;;  %3485 = vst [vmem:[#allocation111_spill] sm:$0xff] %v2176_v61  ;;  %1389 = vrsqrt.f32 %v2148_v30  ;;  %v2188_v27 = vmul.f32 %v2176_v61, %v130_v43  ;;  %vm295_vm15 = vcmp.gt.f32.partialorder %v2150_v63, 0.0  ;;  %vm296_vm4 = vcmp.gt.f32.partialorder %v2148_v30, 0.0 }
  0xd0   :  { %3486 = vst [vmem:[#allocation112_spill] sm:$0xff] %v2179_v46  ;;  %v2183_v25 = vadd.f32 1.0, %v234_v22  ;;  %v2185_v7 = vadd.f32 1.0, %v231_v41  ;;  %v2191_v28 = vpop.eup %1379  ;;  %v2200_v22 = vsel %vm1001_vm9, %v1002_v23, %v1000_v37  ;;  %v1005_v41 = vmul.f32 %v1885_v40, %v1735_v56 }
  0xd1   :  { %3487 = vst [vmem:[#allocation113_spill] sm:$0xff] %v2188_v27  ;;  %3488 = vst [vmem:[#allocation114_spill] sm:$0xff] %v2200_v22  ;;  %v2204_v43 = vpop.eup %1381  ;;  %v2208_v58 = vsel %vm291_vm10, %v2191_v28, 0.0  ;;  %v1268_v37 = vpack.c.bf16 %v2188_v27, %v2179_v46  ;;  %v133_v22 = vld [vmem:[%s3154_s1 + $0xd0] sm:$0xff]  ;;  %v134_v46 = vld [vmem:[%s3154_s1 + $0xd8] sm:$0xff]  ;;  %vm1029_vm8 = vcmp.eq.f32.partialorder %v1818_v24, 0.0 }
  0xd2   :  { %1266 = vmatpush1.bf16.msra.mxu0 %v1265_v44  ;;  %3489 = vst [vmem:[#allocation115_spill] sm:$0xff] %v2208_v58  ;;  %v2216_v23 = vsel %vm292_vm11, %v2204_v43, 0.0  ;;  %1391 = vrsqrt.f32 %v2185_v7  ;;  %v2221_v40 = vmul.f32 %v2208_v58, %v131_v45  ;;  %v1007_v27 = vsel %vm1006_vm14, %v1735_v56, %v1005_v41 }
  0xd3   :  { %1267 = vmatprep.subr.bf16.mxu0 %v3440_v0  ;;  %3490 = vst [vmem:[#allocation116_spill] sm:$0xff] %v2216_v23  ;;  %v2224_v44 = vmul.f32 %v2216_v23, %v132_v52  ;;  %1393 = vrsqrt.f32 %v2183_v25  ;;  %v1009_v52 = vand.u32 2147483648, %v1735_v56  ;;  %v1012_v45 = vmul.f32 %v1916_v31, %v1779_v42 }
  0xd4   :  { %v2231_v61 = vpop.eup %1383  ;;  %v1019_v58 = vmul.f32 %v1935_v1, %v1777_v2  ;;  %vm297_vm5 = vcmp.gt.f32.partialorder %v2185_v7, 0.0  ;;  %vm1034_vm9 = vcmp.eq.f32.partialorder %v1816_v47, inf  ;;  %vm298_vm10 = vcmp.gt.f32.partialorder %v2183_v25, 0.0 }
  0xd5   :  { %v2241_v23 = vpop.eup %1385  ;;  %v2246_v41 = vsel %vm293_vm12, %v2231_v61, 0.0  ;;  %v1271_v17 = vpack.c.bf16 %v2224_v44, %v2221_v40  ;;  %v1014_v21 = vsel %vm1013_vm1, %v1779_v42, %v1012_v45  ;;  %v137_v42 = vld [vmem:[%s3154_s1 + $0xf0] sm:$0xff]  ;;  %vm1036_vm11 = vcmp.eq.f32.partialorder %v1816_v47, 0.0 }
  0xd6   :  { %1269 = vmatpush1.bf16.msra.mxu0 %v1268_v37  ;;  %3491 = vst [vmem:[#allocation117_spill] sm:$0xff] %v2246_v41  ;;  %v2256_v56 = vsel %vm294_vm13, %v2241_v23, 0.0  ;;  %v2259_v31 = vmul.f32 %v2246_v41, %v133_v22  ;;  %v2261_v37 = vsel %vm1008_vm0, %v1009_v52, %v1007_v27  ;;  %v136_v22 = vld [vmem:[%s3154_s1 + $0xe8] sm:$0xff]  ;;  %v2289_v52 = vsel %vm1015_vm2, %v1016_v29, %v1014_v21 }
  0xd7   :  { %1270 = vmatprep.subr.bf16.mxu0 %v3440_v0  ;;  %3492 = vst [vmem:[#allocation118_spill] sm:$0xff] %v2256_v56  ;;  %3493 = vst [vmem:[#allocation119_spill] sm:$0xff] %v2261_v37  ;;  %v2269_v1 = vmul.f32 %v2256_v56, %v134_v46  ;;  %v1021_v45 = vsel %vm1020_vm3, %v1777_v2, %v1019_v58  ;;  %v1023_v21 = vand.u32 2147483648, %v1777_v2  ;;  %v1030_v58 = vand.u32 2147483648, %v1818_v24  ;;  %v138_v2 = vld [vmem:[%s3154_s1 + $0xf8] sm:$0xff] }
  0xd8   :  { %v2264_v16 = vpop.eup %1387  ;;  %3495 = vst [vmem:[#allocation121_spill] sm:$0xff] %v2289_v52  ;;  %vm1041_vm12 = vcmp.eq.f32.partialorder %v1860_v19, inf  ;;  %vm1043_vm13 = vcmp.eq.f32.partialorder %v1860_v19, 0.0  ;;  %vm1048_vm14 = vcmp.eq.f32.partialorder %v1858_v13, inf  ;;  %vm1055_vm0 = vcmp.eq.f32.partialorder %v1907_v57, inf }
  0xd9   :  { %v2276_v27 = vpop.eup %1389  ;;  %v2285_v46 = vsel %vm295_vm15, %v2264_v16, 0.0  ;;  %v1274_v56 = vpack.c.bf16 %v2269_v1, %v2259_v31  ;;  %vm1050_vm15 = vcmp.eq.f32.partialorder %v1858_v13, 0.0  ;;  %vm1057_vm1 = vcmp.eq.f32.partialorder %v1907_v57, 0.0 }
  0xda   :  { %3494 = vst [vmem:[#allocation120_spill] sm:$0xff] %v2285_v46  ;;  %1272 = vmatpush1.bf16.msra.mxu0 %v1271_v17  ;;  %v2293_v37 = vsel %vm296_vm4, %v2276_v27, 0.0  ;;  %v2301_v41 = vmul.f32 %v2285_v46, %v135_v20  ;;  %v1026_v17 = vmul.f32 %v1956_v55, %v1818_v24  ;;  %v1033_v20 = vmul.f32 %v1969_v34, %v1816_v47 }
  0xdb   :  { %3496 = vst [vmem:[#allocation122_spill] sm:$0xff] %v2293_v37  ;;  %1273 = vmatprep.subr.bf16.mxu0 %v3440_v0  ;;  %v2307_v29 = vmul.f32 %v2293_v37, %v136_v22  ;;  %v2321_v55 = vsel %vm1022_vm6, %v1023_v21, %v1021_v45  ;;  %vm1062_vm2 = vcmp.eq.f32.partialorder %v1905_v8, inf  ;;  %vm1064_vm3 = vcmp.eq.f32.partialorder %v1905_v8, 0.0 }
  0xdc   :  { %v2316_v52 = vpop.eup %1391  ;;  %3497 = vst [vmem:[#allocation123_spill] sm:$0xff] %v2321_v55  ;;  %v1028_v22 = vsel %vm1027_vm7, %v1818_v24, %v1026_v17  ;;  %v1035_v45 = vsel %vm1034_vm9, %v1816_v47, %v1033_v20  ;;  %vm1069_vm4 = vcmp.eq.f32.partialorder %v1960_v15, inf  ;;  %vm1076_vm6 = vcmp.eq.f32.partialorder %v1958_v35, inf }
  0xdd   :  { %v2326_v37 = vpop.eup %1393  ;;  %v2332_v34 = vsel %vm297_vm5, %v2316_v52, 0.0  ;;  %v2334_v46 = vsel %vm1029_vm8, %v1030_v58, %v1028_v22  ;;  %v1277_v17 = vpack.c.bf16 %v2307_v29, %v2301_v41  ;;  %v1040_v58 = vmul.f32 %v2003_v6, %v1860_v19 }
  0xde   :  { %1275 = vmatpush1.bf16.msra.mxu0 %v1274_v56  ;;  %3498 = vst [vmem:[#allocation124_spill] sm:$0xff] %v2334_v46  ;;  %v2339_v24 = vsel %vm298_vm10, %v2326_v37, 0.0  ;;  %v2342_v21 = vmul.f32 %v2332_v34, %v137_v42  ;;  %v1037_v56 = vand.u32 2147483648, %v1816_v47  ;;  %v1044_v42 = vand.u32 2147483648, %v1860_v19 }
  0xdf   :  { %1276 = vmatprep.subr.bf16.mxu0 %v3440_v0  ;;  %v2348_v55 = vmul.f32 %v2339_v24, %v138_v2  ;;  %v1047_v22 = vmul.f32 %v2011_v26, %v1858_v13  ;;  %v1042_v2 = vsel %vm1041_vm12, %v1860_v19, %v1040_v58  ;;  %v1054_v26 = vmul.f32 %v2040_v53, %v1907_v57 }
  0xe0   :  { %v2353_v20 = vsel %vm1036_vm11, %v1037_v56, %v1035_v45  ;;  %v2365_v47 = vsel %vm1043_vm13, %v1044_v42, %v1042_v2  ;;  %v1051_v45 = vand.u32 2147483648, %v1858_v13  ;;  %v1058_v56 = vand.u32 2147483648, %v1907_v57 }
  0xe1   :  { %3499 = vst [vmem:[#allocation125_spill] sm:$0xff] %v2353_v20  ;;  %v1280_v46 = vpack.c.bf16 %v2348_v55, %v2342_v21  ;;  %3500 = vst [vmem:[#allocation126_spill] sm:$0xff] %v2365_v47  ;;  %v1049_v6 = vsel %vm1048_vm14, %v1858_v13, %v1047_v22  ;;  %v1061_v19 = vmul.f32 %v2050_v60, %v1905_v8  ;;  %v1065_v13 = vand.u32 2147483648, %v1905_v8  ;;  %v3562_v47 = vld [vmem:[#allocation49_spill] sm:$0xff]  ;;  %v3563_v20 = vld [vmem:[#allocation48_spill] sm:$0xff] }
  0xe2   :  { %1278 = vmatpush1.bf16.msra.mxu0 %v1277_v17  ;;  %v2376_v17 = vsel %vm1050_vm15, %v1051_v45, %v1049_v6  ;;  %v1056_v58 = vsel %vm1055_vm0, %v1907_v57, %v1054_v26  ;;  %v1068_v22 = vmul.f32 %v2078_v49, %v1960_v15  ;;  %v1072_v60 = vand.u32 2147483648, %v1960_v15 }
  0xe3   :  { %1279 = vmatprep.subr.bf16.mxu0 %v3440_v0  ;;  %3501 = vst [vmem:[#allocation127_spill] sm:$0xff] %v2376_v17  ;;  %v2381_v42 = vsel %vm1057_vm1, %v1058_v56, %v1056_v58  ;;  %v1063_v53 = vsel %vm1062_vm2, %v1905_v8, %v1061_v19  ;;  %v1075_v57 = vmul.f32 %v2090_v18, %v1958_v35  ;;  %vm1071_vm5 = vcmp.eq.f32.partialorder %v1960_v15, 0.0  ;;  %v3561_v17 = vld [vmem:[#allocation42_spill] sm:$0xff] }
  0xe4   :  { %3502 = vst [vmem:[#allocation128_spill] sm:$0xff] %v2381_v42  ;;  %v2392_v2 = vsel %vm1064_vm3, %v1065_v13, %v1063_v53  ;;  %v1079_v6 = vand.u32 2147483648, %v1958_v35  ;;  %v1082_v45 = vmul.f32 %v2111_v32, %v1995_v39  ;;  %vm1078_vm7 = vcmp.eq.f32.partialorder %v1958_v35, 0.0  ;;  %v3560_v42 = vld [vmem:[#allocation43_spill] sm:$0xff] }
  0xe5   :  { %3503 = vst [vmem:[#allocation129_spill] sm:$0xff] %v2392_v2  ;;  %v1077_v8 = vsel %vm1076_vm6, %v1958_v35, %v1075_v57  ;;  %vm1083_vm8 = vcmp.eq.f32.partialorder %v1995_v39, inf  ;;  %v1089_v18 = vmul.f32 %v2124_v62, %v1993_v51  ;;  %vm1085_vm9 = vcmp.eq.f32.partialorder %v1995_v39, 0.0  ;;  %v3559_v2 = vld [vmem:[#allocation44_spill] sm:$0xff] }
  0xe6   :  { %1281 = vmatpush1.bf16.msra.mxu0 %v1280_v46  ;;  %v1070_v46 = vsel %vm1069_vm4, %v1960_v15, %v1068_v22  ;;  %v1086_v15 = vand.u32 2147483648, %v1995_v39  ;;  %v2410_v26 = vsel %vm1078_vm7, %v1079_v6, %v1077_v8  ;;  %v1084_v56 = vsel %vm1083_vm8, %v1995_v39, %v1082_v45 }
  0xe7   :  { %v2398_v49 = vsel %vm1071_vm5, %v1072_v60, %v1070_v46  ;;  %3505 = vst [vmem:[#allocation131_spill] sm:$0xff] %v2410_v26  ;;  %vm1090_vm10 = vcmp.eq.f32.partialorder %v1993_v51, inf  ;;  %v1093_v35 = vand.u32 2147483648, %v1993_v51  ;;  %v1096_v58 = vmul.f32 %v2158_v59, %v2031_v38  ;;  %v3557_v26 = vld [vmem:[#allocation38_spill] sm:$0xff] }
  0xe8   :  { %3504 = vst [vmem:[#allocation130_spill] sm:$0xff] %v2398_v49  ;;  %v2415_v32 = vsel %vm1085_vm9, %v1086_v15, %v1084_v56  ;;  %v1091_v19 = vsel %vm1090_vm10, %v1993_v51, %v1089_v18  ;;  %vm1092_vm11 = vcmp.eq.f32.partialorder %v1993_v51, 0.0  ;;  %vm1097_vm12 = vcmp.eq.f32.partialorder %v2031_v38, inf  ;;  %v3558_v49 = vld [vmem:[#allocation45_spill] sm:$0xff] }
  0xe9   :  { %492 = vmatmul.mubr.f32.vlgmr.msra.gmra.mrb[0].mxu0 %v1424_v5  ;;  %3506 = vst [vmem:[#allocation132_spill] sm:$0xff] %v2415_v32  ;;  %v1100_v62 = vand.u32 2147483648, %v2031_v38  ;;  %v1103_v39 = vmul.f32 %v2165_v14, %v2029_v48  ;;  %v2428_v53 = vsel %vm1092_vm11, %v1093_v35, %v1091_v19  ;;  %v1098_v13 = vsel %vm1097_vm12, %v2031_v38, %v1096_v58  ;;  %v3556_v32 = vld [vmem:[#allocation39_spill] sm:$0xff] }
  0xea   :  { %496 = vmatprep.mubr.f32.mxu0 %v1438_v12  ;;  %3507 = vst [vmem:[#allocation133_spill] sm:$0xff] %v2428_v53  ;;  %vm1099_vm13 = vcmp.eq.f32.partialorder %v2031_v38, 0.0  ;;  %vm1104_vm14 = vcmp.eq.f32.partialorder %v2029_v48, inf  ;;  %v1107_v22 = vand.u32 2147483648, %v2029_v48  ;;  %v1110_v60 = vmul.f32 %v2191_v28, %v2069_v50  ;;  %v3555_v53 = vld [vmem:[#allocation40_spill] sm:$0xff] }
  0xeb   :  { %v2433_v59 = vsel %vm1099_vm13, %v1100_v62, %v1098_v13  ;;  %v1105_v51 = vsel %vm1104_vm14, %v2029_v48, %v1103_v39  ;;  %vm1106_vm15 = vcmp.eq.f32.partialorder %v2029_v48, 0.0  ;;  %vm1111_vm0 = vcmp.eq.f32.partialorder %v2069_v50, inf  ;;  %v3516_v13 = vld [vmem:[#allocation4_spill] sm:$0xff] }
  0xec   :  { %3508 = vst [vmem:[#allocation134_spill] sm:$0xff] %v2433_v59  ;;  %v1114_v14 = vand.u32 2147483648, %v2069_v50  ;;  %v1117_v38 = vmul.f32 %v2204_v43, %v2067_v54  ;;  %v2445_v57 = vsel %vm1106_vm15, %v1107_v22, %v1105_v51  ;;  %v1112_v46 = vsel %vm1111_vm0, %v2069_v50, %v1110_v60  ;;  %v3517_v51 = vld [vmem:[#allocation3_spill] sm:$0xff]  ;;  %v3554_v59 = vld [vmem:[#allocation41_spill] sm:$0xff] }
  0xed   :  { %497 = vmatmul.mubr.f32.gmra.mrb[2].mxu0 %v1436_v11  ;;  %3509 = vst [vmem:[#allocation135_spill] sm:$0xff] %v2445_v57  ;;  %vm1113_vm1 = vcmp.eq.f32.partialorder %v2069_v50, 0.0  ;;  %vm1118_vm2 = vcmp.eq.f32.partialorder %v2067_v54, inf  ;;  %v1121_v8 = vand.u32 2147483648, %v2067_v54  ;;  %v1124_v43 = vmul.f32 %v2231_v61, %v2115_v36  ;;  %v3553_v57 = vld [vmem:[#allocation34_spill] sm:$0xff] }
  0xee   :  { %501 = vmatprep.mubr.f32.mxu0 %v1422_v4  ;;  %v2451_v28 = vsel %vm1113_vm1, %v1114_v14, %v1112_v46  ;;  %v1119_v48 = vsel %vm1118_vm2, %v2067_v54, %v1117_v38  ;;  %vm1120_vm3 = vcmp.eq.f32.partialorder %v2067_v54, 0.0  ;;  %vm1125_vm4 = vcmp.eq.f32.partialorder %v2115_v36, inf  ;;  %v3520_v38 = vld [vmem:[#allocation2_spill] sm:$0xff]  ;;  %v3522_v46 = vld [vmem:[#allocation9_spill] sm:$0xff] }
  0xef   :  { %3510 = vst [vmem:[#allocation136_spill] sm:$0xff] %v2451_v28  ;;  %v1128_v6 = vand.u32 2147483648, %v2115_v36  ;;  %v1131_v50 = vmul.f32 %v2241_v23, %v2113_v33  ;;  %v2462_v45 = vsel %vm1120_vm3, %v1121_v8, %v1119_v48  ;;  %v1126_v15 = vsel %vm1125_vm4, %v2115_v36, %v1124_v43  ;;  %v3513_v23 = vld [vmem:[#allocation5_spill] sm:$0xff]  ;;  %v3523_v48 = vld [vmem:[#allocation8_spill] sm:$0xff]  ;;  %v3524_v8 = vld [vmem:[#allocation7_spill] sm:$0xff] }
  0xf0   :  { %3511 = vst [vmem:[#allocation137_spill] sm:$0xff] %v2462_v45  ;;  %vm1127_vm5 = vcmp.eq.f32.partialorder %v2115_v36, 0.0  ;;  %vm1132_vm6 = vcmp.eq.f32.partialorder %v2113_v33, inf  ;;  %v1135_v18 = vand.u32 2147483648, %v2113_v33  ;;  %v1138_v56 = vmul.f32 %v2264_v16, %v2150_v63  ;;  %v3526_v43 = vld [vmem:[#allocation13_spill] sm:$0xff]  ;;  %v3551_v45 = vld [vmem:[#allocation36_spill] sm:$0xff] }
  0xf1   :  { %502 = vmatmul.mubr.f32.gmra.mrb[4].mxu0 %v1420_v3  ;;  %v2468_v61 = vsel %vm1127_vm5, %v1128_v6, %v1126_v15  ;;  %v1133_v54 = vsel %vm1132_vm6, %v2113_v33, %v1131_v50  ;;  %vm1134_vm7 = vcmp.eq.f32.partialorder %v2113_v33, 0.0  ;;  %vm1139_vm8 = vcmp.eq.f32.partialorder %v2150_v63, inf  ;;  %v3527_v6 = vld [vmem:[#allocation12_spill] sm:$0xff]  ;;  %v3528_v50 = vld [vmem:[#allocation11_spill] sm:$0xff]  ;;  %v3529_v15 = vld [vmem:[#allocation10_spill] sm:$0xff] }
  0xf2   :  { %506 = vmatprep.mubr.f32.mxu0 %v1434_v10  ;;  %3512 = vst [vmem:[#allocation138_spill] sm:$0xff] %v2468_v61  ;;  %v1142_v36 = vand.u32 2147483648, %v2150_v63  ;;  %v1145_v19 = vmul.f32 %v2276_v27, %v2148_v30  ;;  %v2480_v35 = vsel %vm1134_vm7, %v1135_v18, %v1133_v54  ;;  %v1140_v58 = vsel %vm1139_vm8, %v2150_v63, %v1138_v56  ;;  %v3531_v54 = vld [vmem:[#allocation16_spill] sm:$0xff]  ;;  %v3532_v18 = vld [vmem:[#allocation15_spill] sm:$0xff]  ;;  %v3533_v56 = vld [vmem:[#allocation14_spill] sm:$0xff] }
  0xf3   :  { %3514 = vst [vmem:[#allocation5_spill] sm:$0xff] %v2480_v35  ;;  %vm1141_vm9 = vcmp.eq.f32.partialorder %v2150_v63, 0.0  ;;  %vm1146_vm10 = vcmp.eq.f32.partialorder %v2148_v30, inf  ;;  %v1149_v33 = vand.u32 2147483648, %v2148_v30  ;;  %v1152_v39 = vmul.f32 %v2316_v52, %v2185_v7  ;;  %v3549_v35 = vld [vmem:[#allocation30_spill] sm:$0xff]  ;;  %v3550_v61 = vld [vmem:[#allocation37_spill] sm:$0xff] }
  0xf4   :  { %v2485_v16 = vsel %vm1141_vm9, %v1142_v36, %v1140_v58  ;;  %v1147_v62 = vsel %vm1146_vm10, %v2148_v30, %v1145_v19  ;;  %vm1148_vm11 = vcmp.eq.f32.partialorder %v2148_v30, 0.0  ;;  %vm1153_vm12 = vcmp.eq.f32.partialorder %v2185_v7, inf  ;;  %v3534_v36 = vld [vmem:[#allocation21_spill] sm:$0xff]  ;;  %v3535_v19 = vld [vmem:[#allocation20_spill] sm:$0xff]  ;;  %v3536_v58 = vld [vmem:[#allocation19_spill] sm:$0xff] }
  0xf5   :  { %507 = vmatmul.mubr.f32.gmra.mrb[6].mxu0 %v1432_v9  ;;  %3515 = vst [vmem:[#allocation139_spill] sm:$0xff] %v2485_v16  ;;  %v1156_v27 = vand.u32 2147483648, %v2185_v7  ;;  %v1159_v63 = vmul.f32 %v2326_v37, %v2183_v25  ;;  %v2498_v22 = vsel %vm1148_vm11, %v1149_v33, %v1147_v62  ;;  %v1154_v60 = vsel %vm1153_vm12, %v2185_v7, %v1152_v39  ;;  %v3537_v62 = vld [vmem:[#allocation18_spill] sm:$0xff]  ;;  %v3538_v33 = vld [vmem:[#allocation25_spill] sm:$0xff]  ;;  %v3539_v39 = vld [vmem:[#allocation24_spill] sm:$0xff] }
  0xf6   :  { %511 = vmatprep.mubr.f32.mxu0 %v3513_v23  ;;  %3518 = vst [vmem:[#allocation4_spill] sm:$0xff] %v2498_v22  ;;  %vm1155_vm13 = vcmp.eq.f32.partialorder %v2185_v7, 0.0  ;;  %vm1160_vm14 = vcmp.eq.f32.partialorder %v2183_v25, inf  ;;  %v1163_v14 = vand.u32 2147483648, %v2183_v25  ;;  %vm1162_vm15 = vcmp.eq.f32.partialorder %v2183_v25, 0.0  ;;  %v3525_v7 = vld [vmem:[#allocation6_spill] sm:$0xff] }
  0xf7   :  { %v2503_v52 = vsel %vm1155_vm13, %v1156_v27, %v1154_v60  ;;  %v1161_v30 = vsel %vm1160_vm14, %v2183_v25, %v1159_v63  ;;  %v3530_v25 = vld [vmem:[#allocation17_spill] sm:$0xff]  ;;  %v3540_v27 = vld [vmem:[#allocation23_spill] sm:$0xff]  ;;  %v3541_v63 = vld [vmem:[#allocation22_spill] sm:$0xff]  ;;  %vm1197_vm0 = vcmask 523264  }
  0xf8   :  { %3519 = vst [vmem:[#allocation3_spill] sm:$0xff] %v2503_v52  ;;  %v2509_v37 = vsel %vm1162_vm15, %v1163_v14, %v1161_v30  ;;  %v3542_v60 = vld [vmem:[#allocation29_spill] sm:$0xff]  ;;  %v3543_v30 = vld [vmem:[#allocation28_spill] sm:$0xff]  ;;  %v3544_v14 = vld [vmem:[#allocation27_spill] sm:$0xff] }
  0xf9   :  { %512 = vmatmul.mubr.f32.gmra.mrb[8].mxu0 %v3516_v13  ;;  %3521 = vst [vmem:[#allocation2_spill] sm:$0xff] %v2509_v37  ;;  %v3545_v37 = vld [vmem:[#allocation26_spill] sm:$0xff]  ;;  %v3546_v52 = vld [vmem:[#allocation33_spill] sm:$0xff]  ;;  %v3547_v22 = vld [vmem:[#allocation32_spill] sm:$0xff] }
  0xfa   :  { %516 = vmatprep.mubr.f32.mxu0 %v3517_v51  ;;  %v3548_v16 = vld [vmem:[#allocation31_spill] sm:$0xff] }
  0xfb   :  { %v3552_v28 = vld [vmem:[#allocation35_spill] sm:$0xff] }
  0xfd   :  { %517 = vmatmul.mubr.f32.gmra.mrb[10].mxu0 %v3520_v38 }
  0xfe   :  { %521 = vmatprep.mubr.f32.mxu0 %v3522_v46 }
 0x101   :  { %522 = vmatmul.mubr.f32.gmra.mrb[12].mxu0 %v3523_v48 }
 0x102   :  { %526 = vmatprep.mubr.f32.mxu0 %v3524_v8 }
 0x105   :  { %527 = vmatmul.mubr.f32.gmra.mrb[14].mxu0 %v3525_v7 }
 0x106   :  { %531 = vmatprep.mubr.f32.mxu0 %v3526_v43 }
 0x109   :  { %532 = vmatmul.mubr.f32.gmra.mrb[16].mxu0 %v3527_v6 }
 0x10a   :  { %536 = vmatprep.mubr.f32.mxu0 %v3528_v50 }
 0x10d   :  { %537 = vmatmul.mubr.f32.gmra.mrb[18].mxu0 %v3529_v15 }
 0x10e   :  { %541 = vmatprep.mubr.f32.mxu0 %v3530_v25 }
 0x111   :  { %542 = vmatmul.mubr.f32.gmra.mrb[20].mxu0 %v3531_v54 }
 0x112   :  { %546 = vmatprep.mubr.f32.mxu0 %v3532_v18 }
 0x115   :  { %547 = vmatmul.mubr.f32.gmra.mrb[22].mxu0 %v3533_v56 }
 0x116   :  { %551 = vmatprep.mubr.f32.mxu0 %v3534_v36 }
 0x119   :  { %552 = vmatmul.mubr.f32.gmra.mrb[24].mxu0 %v3535_v19 }
 0x11a   :  { %556 = vmatprep.mubr.f32.mxu0 %v3536_v58 }
 0x11d   :  { %557 = vmatmul.mubr.f32.gmra.mrb[26].mxu0 %v3537_v62 }
 0x11e   :  { %561 = vmatprep.mubr.f32.mxu0 %v3538_v33 }
 0x121   :  { %562 = vmatmul.mubr.f32.gmra.mrb[28].mxu0 %v3539_v39 }
 0x122   :  { %566 = vmatprep.mubr.f32.mxu0 %v3540_v27 }
 0x125   :  { %567 = vmatmul.mubr.f32.gmra.mrb[30].mxu0 %v3541_v63 }
 0x126   :  { %571 = vmatprep.mubr.f32.mxu0 %v3542_v60 }
 0x129   :  { %572 = vmatmul.mubr.f32.gmra.mrb[32].mxu0 %v3543_v30 }
 0x12a   :  { %576 = vmatprep.mubr.f32.mxu0 %v3544_v14 }
 0x12d   :  { %577 = vmatmul.mubr.f32.gmra.mrb[34].mxu0 %v3545_v37 }
 0x12e   :  { %581 = vmatprep.mubr.f32.mxu0 %v3546_v52 }
 0x131   :  { %582 = vmatmul.mubr.f32.gmra.mrb[36].mxu0 %v3547_v22 }
 0x132   :  { %586 = vmatprep.mubr.f32.mxu0 %v3548_v16 }
 0x135   :  { %587 = vmatmul.mubr.f32.gmra.mrb[38].mxu0 %v3549_v35 }
 0x136   :  { %591 = vmatprep.mubr.f32.mxu0 %v3550_v61 }
 0x139   :  { %592 = vmatmul.mubr.f32.gmra.mrb[40].mxu0 %v3551_v45 }
 0x13a   :  { %596 = vmatprep.mubr.f32.mxu0 %v3552_v28  ;;  %v3574_v28 = vld [vmem:[#allocation61_spill] sm:$0xff] }
 0x13d   :  { %597 = vmatmul.mubr.f32.gmra.mrb[42].mxu0 %v3553_v57  ;;  %v3564_v57 = vld [vmem:[#allocation47_spill] sm:$0xff] }
 0x13e   :  { %601 = vmatprep.mubr.f32.mxu0 %v3554_v59  ;;  %v3565_v59 = vld [vmem:[#allocation46_spill] sm:$0xff] }
 0x141   :  { %602 = vmatmul.mubr.f32.gmra.mrb[44].mxu0 %v3555_v53  ;;  %v3566_v53 = vld [vmem:[#allocation53_spill] sm:$0xff] }
 0x142   :  { %606 = vmatprep.mubr.f32.mxu0 %v3556_v32  ;;  %v3567_v32 = vld [vmem:[#allocation52_spill] sm:$0xff] }
 0x145   :  { %607 = vmatmul.mubr.f32.gmra.mrb[46].mxu0 %v3557_v26  ;;  %v3568_v26 = vld [vmem:[#allocation51_spill] sm:$0xff] }
 0x146   :  { %611 = vmatprep.mubr.f32.mxu0 %v3558_v49  ;;  %v3569_v49 = vld [vmem:[#allocation50_spill] sm:$0xff] }
 0x149   :  { %612 = vmatmul.mubr.f32.gmra.mrb[48].mxu0 %v3559_v2  ;;  %v3570_v2 = vld [vmem:[#allocation57_spill] sm:$0xff] }
 0x14a   :  { %616 = vmatprep.mubr.f32.mxu0 %v3560_v42  ;;  %v3571_v42 = vld [vmem:[#allocation56_spill] sm:$0xff] }
 0x14d   :  { %617 = vmatmul.mubr.f32.gmra.mrb[50].mxu0 %v3561_v17  ;;  %v3572_v17 = vld [vmem:[#allocation55_spill] sm:$0xff] }
 0x14e   :  { %621 = vmatprep.mubr.f32.mxu0 %v3562_v47  ;;  %v3573_v47 = vld [vmem:[#allocation54_spill] sm:$0xff] }
 0x151   :  { %622 = vmatmul.mubr.f32.gmra.mrb[52].mxu0 %v3563_v20 }
 0x152   :  { %626 = vmatprep.mubr.f32.mxu0 %v3564_v57 }
 0x155   :  { %627 = vmatmul.mubr.f32.gmra.mrb[54].mxu0 %v3565_v59 }
 0x156   :  { %631 = vmatprep.mubr.f32.mxu0 %v3566_v53  ;;  %v3575_v53 = vld [vmem:[#allocation58_spill] sm:$0xff] }
 0x159   :  { %632 = vmatmul.mubr.f32.gmra.mrb[56].mxu0 %v3567_v32  ;;  %v2566_v32 = vmul.f32 %v3575_v53, %v3575_v53  ;;  %v3582_v53 = vld [vmem:[#allocation66_spill] sm:$0xff] }
 0x15a   :  { %636 = vmatprep.mubr.f32.mxu0 %v3568_v26  ;;  %v3577_v26 = vld [vmem:[#allocation59_spill] sm:$0xff] }
 0x15b   :  { %3576 = vst [vmem:[#allocation9_spill] sm:$0xff] %v2566_v32 }
 0x15d   :  { %637 = vmatmul.mubr.f32.gmra.mrb[58].mxu0 %v3569_v49  ;;  %v2570_v49 = vmul.f32 %v3577_v26, %v3577_v26  ;;  %v3583_v26 = vld [vmem:[#allocation63_spill] sm:$0xff] }
 0x15e   :  { %641 = vmatprep.mubr.f32.mxu0 %v3570_v2  ;;  %v3579_v2 = vld [vmem:[#allocation62_spill] sm:$0xff] }
 0x15f   :  { %3578 = vst [vmem:[#allocation8_spill] sm:$0xff] %v2570_v49 }
 0x161   :  { %642 = vmatmul.mubr.f32.gmra.mrb[60].mxu0 %v3571_v42 }
 0x162   :  { %646 = vmatprep.mubr.f32.mxu0 %v3572_v17 }
 0x165   :  { %647 = vmatmul.mubr.f32.gmra.mrb[62].mxu0 %v3573_v47 }
 0x1bc   :  { %v493_v20 = vpop.f32.mrb[0].mxu0 }
 0x1bd   :  { %v495_v57 = vpop.f32.mrb[1].mxu0  ;;  %v494_v59 = vadd.f32 %v493_v20, %v3574_v28 }
 0x1bf   :  { %v2574_v17 = vmul.f32 %v494_v59, %v2566_v32 }
 0x1c0   :  { %v498_v45 = vpop.f32.mrb[2].mxu0 }
 0x1c1   :  { %v499_v61 = vadd.f32 %v498_v45, %v3579_v2  ;;  %v500_v42 = vpop.f32.mrb[3].mxu0  ;;  %3580 = vst [vmem:[#allocation7_spill] sm:$0xff] %v2574_v17  ;;  %v3585_v2 = vld [vmem:[#allocation64_spill] sm:$0xff]  ;;  %v3587_v45 = vld [vmem:[#allocation65_spill] sm:$0xff] }
 0x1c2   :  { %v2585_v42 = vmul.f32 %v3583_v26, %v3583_v26  ;;  %v2589_v59 = vmul.f32 %v3585_v2, %v3585_v2  ;;  %v3590_v26 = vld [vmem:[#allocation69_spill] sm:$0xff]  ;;  %v3591_v2 = vld [vmem:[#allocation67_spill] sm:$0xff] }
 0x1c3   :  { %v2577_v47 = vmul.f32 %v499_v61, %v2570_v49 }
 0x1c4   :  { %v503_v57 = vpop.f32.mrb[4].mxu0  ;;  %3584 = vst [vmem:[#allocation13_spill] sm:$0xff] %v2585_v42  ;;  %3586 = vst [vmem:[#allocation12_spill] sm:$0xff] %v2589_v59 }
 0x1c5   :  { %3581 = vst [vmem:[#allocation6_spill] sm:$0xff] %v2577_v47  ;;  %v505_v20 = vpop.f32.mrb[5].mxu0  ;;  %v1283_v28 = vpack.c.bf16 %v2577_v47, %v2574_v17  ;;  %v504_v35 = vadd.f32 %v503_v57, %v3582_v53 }
 0x1c7   :  { %1284 = vmatpush1.bf16.msra.mxu1 %v1283_v28  ;;  %v2593_v49 = vmul.f32 %v504_v35, %v2585_v42  ;;  %v3593_v35 = vld [vmem:[#allocation68_spill] sm:$0xff] }
 0x1c8   :  { %v508_v16 = vpop.f32.mrb[6].mxu0  ;;  %1285 = vmatprep.subr.bf16.mxu1 %v3440_v0 }
 0x1c9   :  { %v509_v61 = vadd.f32 %v508_v16, %v3587_v45  ;;  %v510_v20 = vpop.f32.mrb[7].mxu0  ;;  %3588 = vst [vmem:[#allocation11_spill] sm:$0xff] %v2593_v49  ;;  %v2604_v16 = vmul.f32 %v3591_v2, %v3591_v2  ;;  %v2608_v45 = vmul.f32 %v3593_v35, %v3593_v35  ;;  %v3598_v2 = vld [vmem:[#allocation75_spill] sm:$0xff]  ;;  %v3599_v35 = vld [vmem:[#allocation73_spill] sm:$0xff] }
 0x1cb   :  { %v2596_v57 = vmul.f32 %v509_v61, %v2589_v59  ;;  %3592 = vst [vmem:[#allocation17_spill] sm:$0xff] %v2604_v16  ;;  %3594 = vst [vmem:[#allocation16_spill] sm:$0xff] %v2608_v45  ;;  %v3595_v61 = vld [vmem:[#allocation70_spill] sm:$0xff] }
 0x1cc   :  { %v513_v28 = vpop.f32.mrb[8].mxu0 }
 0x1cd   :  { %3589 = vst [vmem:[#allocation10_spill] sm:$0xff] %v2596_v57  ;;  %v515_v53 = vpop.f32.mrb[9].mxu0  ;;  %v1286_v47 = vpack.c.bf16 %v2596_v57, %v2593_v49  ;;  %v514_v32 = vadd.f32 %v513_v28, %v3590_v26 }
 0x1cf   :  { %1287 = vmatpush1.bf16.msra.mxu1 %v1286_v47  ;;  %v2612_v59 = vmul.f32 %v514_v32, %v2604_v16  ;;  %v3601_v32 = vld [vmem:[#allocation74_spill] sm:$0xff] }
 0x1d0   :  { %v518_v17 = vpop.f32.mrb[10].mxu0  ;;  %1288 = vmatprep.subr.bf16.mxu1 %v3440_v0 }
 0x1d1   :  { %v519_v20 = vadd.f32 %v518_v17, %v3595_v61  ;;  %v520_v53 = vpop.f32.mrb[11].mxu0  ;;  %3596 = vst [vmem:[#allocation15_spill] sm:$0xff] %v2612_v59  ;;  %v2623_v17 = vmul.f32 %v3599_v35, %v3599_v35  ;;  %v2627_v61 = vmul.f32 %v3601_v32, %v3601_v32  ;;  %v3606_v35 = vld [vmem:[#allocation79_spill] sm:$0xff]  ;;  %v3607_v32 = vld [vmem:[#allocation77_spill] sm:$0xff] }
 0x1d3   :  { %v2615_v28 = vmul.f32 %v519_v20, %v2608_v45  ;;  %3600 = vst [vmem:[#allocation21_spill] sm:$0xff] %v2623_v17  ;;  %3602 = vst [vmem:[#allocation20_spill] sm:$0xff] %v2627_v61  ;;  %v3603_v20 = vld [vmem:[#allocation76_spill] sm:$0xff] }
 0x1d4   :  { %v523_v47 = vpop.f32.mrb[12].mxu0 }
 0x1d5   :  { %3597 = vst [vmem:[#allocation14_spill] sm:$0xff] %v2615_v28  ;;  %v525_v26 = vpop.f32.mrb[13].mxu0  ;;  %v1289_v57 = vpack.c.bf16 %v2615_v28, %v2612_v59  ;;  %v524_v42 = vadd.f32 %v523_v47, %v3598_v2 }
 0x1d7   :  { %1290 = vmatpush1.bf16.msra.mxu1 %v1289_v57  ;;  %v2631_v45 = vmul.f32 %v524_v42, %v2623_v17  ;;  %v3609_v42 = vld [vmem:[#allocation78_spill] sm:$0xff] }
 0x1d8   :  { %v528_v49 = vpop.f32.mrb[14].mxu0  ;;  %1291 = vmatprep.subr.bf16.mxu1 %v3440_v0 }
 0x1d9   :  { %v529_v53 = vadd.f32 %v528_v49, %v3603_v20  ;;  %v530_v26 = vpop.f32.mrb[15].mxu0  ;;  %3604 = vst [vmem:[#allocation19_spill] sm:$0xff] %v2631_v45  ;;  %v2642_v49 = vmul.f32 %v3607_v32, %v3607_v32  ;;  %v2646_v20 = vmul.f32 %v3609_v42, %v3609_v42  ;;  %v3614_v32 = vld [vmem:[#allocation85_spill] sm:$0xff]  ;;  %v3615_v42 = vld [vmem:[#allocation83_spill] sm:$0xff] }
 0x1db   :  { %v2634_v47 = vmul.f32 %v529_v53, %v2627_v61  ;;  %3608 = vst [vmem:[#allocation25_spill] sm:$0xff] %v2642_v49  ;;  %3610 = vst [vmem:[#allocation24_spill] sm:$0xff] %v2646_v20  ;;  %v3611_v53 = vld [vmem:[#allocation80_spill] sm:$0xff] }
 0x1dc   :  { %v533_v57 = vpop.f32.mrb[16].mxu0 }
 0x1dd   :  { %3605 = vst [vmem:[#allocation18_spill] sm:$0xff] %v2634_v47  ;;  %v535_v2 = vpop.f32.mrb[17].mxu0  ;;  %v1292_v28 = vpack.c.bf16 %v2634_v47, %v2631_v45  ;;  %v534_v16 = vadd.f32 %v533_v57, %v3606_v35 }
 0x1df   :  { %1293 = vmatpush1.bf16.msra.mxu1 %v1292_v28  ;;  %v2650_v61 = vmul.f32 %v534_v16, %v2642_v49  ;;  %v3617_v16 = vld [vmem:[#allocation84_spill] sm:$0xff] }
 0x1e0   :  { %v538_v59 = vpop.f32.mrb[18].mxu0  ;;  %1294 = vmatprep.subr.bf16.mxu1 %v3440_v0 }
 0x1e1   :  { %v539_v26 = vadd.f32 %v538_v59, %v3611_v53  ;;  %v540_v2 = vpop.f32.mrb[19].mxu0  ;;  %3612 = vst [vmem:[#allocation23_spill] sm:$0xff] %v2650_v61  ;;  %v2661_v59 = vmul.f32 %v3615_v42, %v3615_v42  ;;  %v2665_v53 = vmul.f32 %v3617_v16, %v3617_v16  ;;  %v3622_v42 = vld [vmem:[#allocation90_spill] sm:$0xff]  ;;  %v3623_v16 = vld [vmem:[#allocation87_spill] sm:$0xff] }
 0x1e3   :  { %v2653_v57 = vmul.f32 %v539_v26, %v2646_v20  ;;  %3616 = vst [vmem:[#allocation29_spill] sm:$0xff] %v2661_v59  ;;  %3618 = vst [vmem:[#allocation28_spill] sm:$0xff] %v2665_v53  ;;  %v3619_v26 = vld [vmem:[#allocation86_spill] sm:$0xff] }
 0x1e4   :  { %v543_v28 = vpop.f32.mrb[20].mxu0 }
 0x1e5   :  { %3613 = vst [vmem:[#allocation22_spill] sm:$0xff] %v2653_v57  ;;  %v545_v35 = vpop.f32.mrb[21].mxu0  ;;  %v1295_v47 = vpack.c.bf16 %v2653_v57, %v2650_v61  ;;  %v544_v17 = vadd.f32 %v543_v28, %v3614_v32 }
 0x1e7   :  { %1296 = vmatpush1.bf16.msra.mxu1 %v1295_v47  ;;  %v2669_v20 = vmul.f32 %v544_v17, %v2661_v59  ;;  %v3625_v17 = vld [vmem:[#allocation89_spill] sm:$0xff] }
 0x1e8   :  { %v548_v45 = vpop.f32.mrb[22].mxu0  ;;  %1297 = vmatprep.subr.bf16.mxu1 %v3440_v0 }
 0x1e9   :  { %v549_v2 = vadd.f32 %v548_v45, %v3619_v26  ;;  %v550_v35 = vpop.f32.mrb[23].mxu0  ;;  %3620 = vst [vmem:[#allocation27_spill] sm:$0xff] %v2669_v20  ;;  %v2680_v45 = vmul.f32 %v3623_v16, %v3623_v16  ;;  %v2684_v26 = vmul.f32 %v3625_v17, %v3625_v17  ;;  %v3630_v16 = vld [vmem:[#allocation94_spill] sm:$0xff]  ;;  %v3631_v17 = vld [vmem:[#allocation92_spill] sm:$0xff] }
 0x1eb   :  { %v2672_v28 = vmul.f32 %v549_v2, %v2665_v53  ;;  %3624 = vst [vmem:[#allocation33_spill] sm:$0xff] %v2680_v45  ;;  %3626 = vst [vmem:[#allocation32_spill] sm:$0xff] %v2684_v26  ;;  %v3627_v2 = vld [vmem:[#allocation91_spill] sm:$0xff] }
 0x1ec   :  { %v553_v47 = vpop.f32.mrb[24].mxu0 }
 0x1ed   :  { %3621 = vst [vmem:[#allocation26_spill] sm:$0xff] %v2672_v28  ;;  %v555_v32 = vpop.f32.mrb[25].mxu0  ;;  %v1298_v57 = vpack.c.bf16 %v2672_v28, %v2669_v20  ;;  %v554_v49 = vadd.f32 %v553_v47, %v3622_v42 }
 0x1ef   :  { %1299 = vmatpush1.bf16.msra.mxu1 %v1298_v57  ;;  %v2688_v53 = vmul.f32 %v554_v49, %v2680_v45  ;;  %v3633_v49 = vld [vmem:[#allocation93_spill] sm:$0xff] }
 0x1f0   :  { %v558_v61 = vpop.f32.mrb[26].mxu0  ;;  %1300 = vmatprep.subr.bf16.mxu1 %v3440_v0 }
 0x1f1   :  { %v559_v35 = vadd.f32 %v558_v61, %v3627_v2  ;;  %v560_v32 = vpop.f32.mrb[27].mxu0  ;;  %3628 = vst [vmem:[#allocation61_spill] sm:$0xff] %v2688_v53  ;;  %v2699_v61 = vmul.f32 %v3631_v17, %v3631_v17  ;;  %v2703_v2 = vmul.f32 %v3633_v49, %v3633_v49  ;;  %v3638_v17 = vld [vmem:[#allocation99_spill] sm:$0xff]  ;;  %v3639_v49 = vld [vmem:[#allocation97_spill] sm:$0xff] }
 0x1f3   :  { %v2691_v47 = vmul.f32 %v559_v35, %v2684_v26  ;;  %3632 = vst [vmem:[#allocation59_spill] sm:$0xff] %v2699_v61  ;;  %3634 = vst [vmem:[#allocation62_spill] sm:$0xff] %v2703_v2  ;;  %v3635_v35 = vld [vmem:[#allocation95_spill] sm:$0xff] }
 0x1f4   :  { %v563_v57 = vpop.f32.mrb[28].mxu0 }
 0x1f5   :  { %3629 = vst [vmem:[#allocation58_spill] sm:$0xff] %v2691_v47  ;;  %v565_v42 = vpop.f32.mrb[29].mxu0  ;;  %v1301_v28 = vpack.c.bf16 %v2691_v47, %v2688_v53  ;;  %v564_v59 = vadd.f32 %v563_v57, %v3630_v16 }
 0x1f7   :  { %1302 = vmatpush1.bf16.msra.mxu1 %v1301_v28  ;;  %v2707_v26 = vmul.f32 %v564_v59, %v2699_v61  ;;  %v3641_v59 = vld [vmem:[#allocation98_spill] sm:$0xff] }
 0x1f8   :  { %v568_v20 = vpop.f32.mrb[30].mxu0  ;;  %1303 = vmatprep.subr.bf16.mxu1 %v3440_v0 }
 0x1f9   :  { %v569_v32 = vadd.f32 %v568_v20, %v3635_v35  ;;  %v570_v42 = vpop.f32.mrb[31].mxu0  ;;  %3636 = vst [vmem:[#allocation66_spill] sm:$0xff] %v2707_v26  ;;  %v2718_v20 = vmul.f32 %v3639_v49, %v3639_v49  ;;  %v2722_v35 = vmul.f32 %v3641_v59, %v3641_v59  ;;  %v3646_v49 = vld [vmem:[#allocation103_spill] sm:$0xff]  ;;  %v3647_v59 = vld [vmem:[#allocation101_spill] sm:$0xff] }
 0x1fb   :  { %v2710_v57 = vmul.f32 %v569_v32, %v2703_v2  ;;  %3640 = vst [vmem:[#allocation64_spill] sm:$0xff] %v2718_v20  ;;  %3642 = vst [vmem:[#allocation65_spill] sm:$0xff] %v2722_v35  ;;  %v3643_v32 = vld [vmem:[#allocation100_spill] sm:$0xff] }
 0x1fc   :  { %v573_v28 = vpop.f32.mrb[32].mxu0 }
 0x1fd   :  { %3637 = vst [vmem:[#allocation63_spill] sm:$0xff] %v2710_v57  ;;  %v575_v16 = vpop.f32.mrb[33].mxu0  ;;  %v1304_v47 = vpack.c.bf16 %v2710_v57, %v2707_v26  ;;  %v574_v45 = vadd.f32 %v573_v28, %v3638_v17 }
 0x1ff   :  { %1305 = vmatpush1.bf16.msra.mxu1 %v1304_v47  ;;  %v2726_v2 = vmul.f32 %v574_v45, %v2718_v20  ;;  %v3649_v45 = vld [vmem:[#allocation102_spill] sm:$0xff] }
 0x200   :  { %v578_v53 = vpop.f32.mrb[34].mxu0  ;;  %1306 = vmatprep.subr.bf16.mxu1 %v3440_v0 }
 0x201   :  { %v579_v42 = vadd.f32 %v578_v53, %v3643_v32  ;;  %v580_v16 = vpop.f32.mrb[35].mxu0  ;;  %3644 = vst [vmem:[#allocation69_spill] sm:$0xff] %v2726_v2  ;;  %v2737_v53 = vmul.f32 %v3647_v59, %v3647_v59  ;;  %v2741_v32 = vmul.f32 %v3649_v45, %v3649_v45  ;;  %v3654_v59 = vld [vmem:[#allocation108_spill] sm:$0xff]  ;;  %v3655_v45 = vld [vmem:[#allocation105_spill] sm:$0xff] }
 0x203   :  { %v2729_v28 = vmul.f32 %v579_v42, %v2722_v35  ;;  %3648 = vst [vmem:[#allocation68_spill] sm:$0xff] %v2737_v53  ;;  %3650 = vst [vmem:[#allocation70_spill] sm:$0xff] %v2741_v32  ;;  %v3651_v42 = vld [vmem:[#allocation104_spill] sm:$0xff] }
 0x204   :  { %v583_v47 = vpop.f32.mrb[36].mxu0 }
 0x205   :  { %3645 = vst [vmem:[#allocation67_spill] sm:$0xff] %v2729_v28  ;;  %v585_v17 = vpop.f32.mrb[37].mxu0  ;;  %v1307_v57 = vpack.c.bf16 %v2729_v28, %v2726_v2  ;;  %v584_v61 = vadd.f32 %v583_v47, %v3646_v49 }
 0x207   :  { %1308 = vmatpush1.bf16.msra.mxu1 %v1307_v57  ;;  %v2745_v35 = vmul.f32 %v584_v61, %v2737_v53  ;;  %v3657_v61 = vld [vmem:[#allocation107_spill] sm:$0xff] }
 0x208   :  { %v588_v26 = vpop.f32.mrb[38].mxu0  ;;  %1309 = vmatprep.subr.bf16.mxu1 %v3440_v0 }
 0x209   :  { %v589_v16 = vadd.f32 %v588_v26, %v3651_v42  ;;  %v590_v17 = vpop.f32.mrb[39].mxu0  ;;  %3652 = vst [vmem:[#allocation75_spill] sm:$0xff] %v2745_v35  ;;  %v2756_v26 = vmul.f32 %v3655_v45, %v3655_v45  ;;  %v2760_v42 = vmul.f32 %v3657_v61, %v3657_v61  ;;  %v3661_v45 = vld [vmem:[#allocation112_spill] sm:$0xff]  ;;  %v3662_v61 = vld [vmem:[#allocation110_spill] sm:$0xff] }
 0x20b   :  { %v2748_v47 = vmul.f32 %v589_v16, %v2741_v32  ;;  %3656 = vst [vmem:[#allocation74_spill] sm:$0xff] %v2756_v26  ;;  %3658 = vst [vmem:[#allocation76_spill] sm:$0xff] %v2760_v42  ;;  %v3659_v16 = vld [vmem:[#allocation109_spill] sm:$0xff] }
 0x20c   :  { %v593_v57 = vpop.f32.mrb[40].mxu0 }
 0x20d   :  { %3653 = vst [vmem:[#allocation73_spill] sm:$0xff] %v2748_v47  ;;  %v595_v49 = vpop.f32.mrb[41].mxu0  ;;  %v1310_v28 = vpack.c.bf16 %v2748_v47, %v2745_v35  ;;  %v594_v20 = vadd.f32 %v593_v57, %v3654_v59 }
 0x20f   :  { %1311 = vmatpush1.bf16.msra.mxu1 %v1310_v28  ;;  %v2764_v32 = vmul.f32 %v594_v20, %v2756_v26  ;;  %v3663_v20 = vld [vmem:[#allocation111_spill] sm:$0xff] }
 0x210   :  { %v598_v2 = vpop.f32.mrb[42].mxu0  ;;  %1312 = vmatprep.subr.bf16.mxu1 %v3440_v0 }
 0x211   :  { %v599_v17 = vadd.f32 %v598_v2, %v3659_v16  ;;  %v600_v49 = vpop.f32.mrb[43].mxu0  ;;  %v2775_v2 = vmul.f32 %v3662_v61, %v3662_v61  ;;  %v2779_v16 = vmul.f32 %v3663_v20, %v3663_v20  ;;  %v3667_v20 = vld [vmem:[#allocation115_spill] sm:$0xff] }
 0x213   :  { %v2767_v57 = vmul.f32 %v599_v17, %v2760_v42  ;;  %3664 = vst [vmem:[#allocation77_spill] sm:$0xff] %v2779_v16  ;;  %v3665_v17 = vld [vmem:[#allocation113_spill] sm:$0xff] }
 0x214   :  { %v603_v28 = vpop.f32.mrb[44].mxu0 }
 0x215   :  { %3660 = vst [vmem:[#allocation79_spill] sm:$0xff] %v2767_v57  ;;  %v605_v59 = vpop.f32.mrb[45].mxu0  ;;  %v1313_v47 = vpack.c.bf16 %v2767_v57, %v2764_v32  ;;  %v604_v53 = vadd.f32 %v603_v28, %v3661_v45 }
 0x217   :  { %1314 = vmatpush1.bf16.msra.mxu1 %v1313_v47  ;;  %v2783_v42 = vmul.f32 %v604_v53, %v2775_v2  ;;  %v3668_v53 = vld [vmem:[#allocation116_spill] sm:$0xff] }
 0x218   :  { %v608_v35 = vpop.f32.mrb[46].mxu0  ;;  %1315 = vmatprep.subr.bf16.mxu1 %v3440_v0 }
 0x219   :  { %v609_v49 = vadd.f32 %v608_v35, %v3665_v17  ;;  %v610_v59 = vpop.f32.mrb[47].mxu0  ;;  %v2794_v35 = vmul.f32 %v3667_v20, %v3667_v20  ;;  %v2798_v17 = vmul.f32 %v3668_v53, %v3668_v53  ;;  %v3671_v53 = vld [vmem:[#allocation117_spill] sm:$0xff] }
 0x21b   :  { %v2786_v28 = vmul.f32 %v609_v49, %v2779_v16  ;;  %3669 = vst [vmem:[#allocation80_spill] sm:$0xff] %v2798_v17 }
 0x21c   :  { %v613_v47 = vpop.f32.mrb[48].mxu0 }
 0x21d   :  { %3666 = vst [vmem:[#allocation78_spill] sm:$0xff] %v2786_v28  ;;  %v615_v45 = vpop.f32.mrb[49].mxu0  ;;  %v1316_v57 = vpack.c.bf16 %v2786_v28, %v2783_v42  ;;  %v614_v61 = vadd.f32 %v613_v47, %v2221_v40 }
 0x21f   :  { %1317 = vmatpush1.bf16.msra.mxu1 %v1316_v57  ;;  %v2802_v45 = vmul.f32 %v614_v61, %v2794_v35 }
 0x220   :  { %v618_v26 = vpop.f32.mrb[50].mxu0  ;;  %1318 = vmatprep.subr.bf16.mxu1 %v3440_v0 }
 0x221   :  { %v619_v49 = vadd.f32 %v618_v26, %v2224_v44  ;;  %v620_v59 = vpop.f32.mrb[51].mxu0  ;;  %v2813_v44 = vmul.f32 %v3671_v53, %v3671_v53  ;;  %v3672_v26 = vld [vmem:[#allocation118_spill] sm:$0xff] }
 0x222   :  { %v2817_v61 = vmul.f32 %v3672_v26, %v3672_v26  ;;  %v3675_v26 = vld [vmem:[#allocation120_spill] sm:$0xff] }
 0x223   :  { %v2805_v40 = vmul.f32 %v619_v49, %v2798_v17 }
 0x224   :  { %v623_v57 = vpop.f32.mrb[52].mxu0  ;;  %3673 = vst [vmem:[#allocation83_spill] sm:$0xff] %v2817_v61 }
 0x225   :  { %3670 = vst [vmem:[#allocation85_spill] sm:$0xff] %v2805_v40  ;;  %v625_v47 = vpop.f32.mrb[53].mxu0  ;;  %v1319_v16 = vpack.c.bf16 %v2805_v40, %v2802_v45  ;;  %v624_v20 = vadd.f32 %v623_v57, %v2259_v31 }
 0x227   :  { %1320 = vmatpush1.bf16.msra.mxu1 %v1319_v16  ;;  %v2821_v47 = vmul.f32 %v624_v20, %v2813_v44 }
 0x228   :  { %v628_v28 = vpop.f32.mrb[54].mxu0  ;;  %1321 = vmatprep.subr.bf16.mxu1 %v3440_v0 }
 0x229   :  { %v629_v49 = vadd.f32 %v628_v28, %v2269_v1  ;;  %v630_v59 = vpop.f32.mrb[55].mxu0  ;;  %v2832_v1 = vmul.f32 %v3675_v26, %v3675_v26  ;;  %v3676_v28 = vld [vmem:[#allocation122_spill] sm:$0xff] }
 0x22a   :  { %v2836_v20 = vmul.f32 %v3676_v28, %v3676_v28 }
 0x22b   :  { %v2824_v31 = vmul.f32 %v629_v49, %v2817_v61 }
 0x22c   :  { %v633_v16 = vpop.f32.mrb[56].mxu0 }
 0x22d   :  { %3674 = vst [vmem:[#allocation84_spill] sm:$0xff] %v2824_v31  ;;  %v635_v57 = vpop.f32.mrb[57].mxu0  ;;  %v1322_v17 = vpack.c.bf16 %v2824_v31, %v2821_v47  ;;  %v634_v53 = vadd.f32 %v633_v16, %v2301_v41 }
 0x22f   :  { %1323 = vmatpush1.bf16.msra.mxu1 %v1322_v17  ;;  %v2840_v57 = vmul.f32 %v634_v53, %v2832_v1 }
 0x230   :  { %v638_v40 = vpop.f32.mrb[58].mxu0  ;;  %1324 = vmatprep.subr.bf16.mxu1 %v3440_v0 }
 0x231   :  { %v639_v49 = vadd.f32 %v638_v40, %v2307_v29  ;;  %v640_v59 = vpop.f32.mrb[59].mxu0  ;;  %v2851_v29 = vmul.f32 %v2332_v34, %v2332_v34  ;;  %v2855_v40 = vmul.f32 %v2339_v24, %v2339_v24  ;;  %v3685_v34 = vld [vmem:[#allocation39_spill] sm:$0xff]  ;;  %v3686_v24 = vld [vmem:[#allocation38_spill] sm:$0xff] }
 0x233   :  { %v2843_v41 = vmul.f32 %v639_v49, %v2836_v20 }
 0x234   :  { %v643_v17 = vpop.f32.mrb[60].mxu0 }
 0x235   :  { %v645_v16 = vpop.f32.mrb[61].mxu0  ;;  %v1325_v61 = vpack.c.bf16 %v2843_v41, %v2840_v57  ;;  %v644_v26 = vadd.f32 %v643_v17, %v2342_v21  ;;  %v3709_v17 = vld [vmem:[#allocation11_spill] sm:$0xff] }
 0x237   :  { %1326 = vmatpush1.bf16.msra.mxu1 %v1325_v61  ;;  %v2859_v49 = vmul.f32 %v644_v26, %v2851_v29 }
 0x238   :  { %v648_v31 = vpop.f32.mrb[62].mxu0  ;;  %1327 = vmatprep.subr.bf16.mxu1 %v3440_v0 }
 0x239   :  { %v649_v53 = vadd.f32 %v648_v31, %v2348_v55  ;;  %v650_v28 = vpop.f32.mrb[63].mxu0  ;;  %v3684_v55 = vld [vmem:[#allocation40_spill] sm:$0xff]  ;;  %v3708_v31 = vld [vmem:[#allocation71_spill] sm:$0xff] }
 0x23b   :  { %v2862_v21 = vmul.f32 %v649_v53, %v2855_v40  ;;  %v3710_v53 = vld [vmem:[#allocation13_spill] sm:$0xff] }
 0x23d   :  { %v1328_v0 = vpack.c.bf16 %v2862_v21, %v2859_v49 }
 0x23f   :  { %1329 = vmatpush1.bf16.msra.mxu1 %v1328_v0 }
 0x242   :  { %749 = vmatmul.mubr.f32.vlgmr.msra.gmra.mrb[0].mxu1 %v1424_v5  ;;  %v3679_v5 = vld [vmem:[#allocation37_spill] sm:$0xff] }
 0x243   :  { %753 = vmatprep.mubr.f32.mxu1 %v1438_v12  ;;  %v3683_v12 = vld [vmem:[#allocation41_spill] sm:$0xff] }
 0x246   :  { %754 = vmatmul.mubr.f32.gmra.mrb[2].mxu1 %v1436_v11  ;;  %v3682_v11 = vld [vmem:[#allocation34_spill] sm:$0xff] }
 0x247   :  { %758 = vmatprep.mubr.f32.mxu1 %v1422_v4  ;;  %v3678_v4 = vld [vmem:[#allocation30_spill] sm:$0xff] }
 0x24a   :  { %759 = vmatmul.mubr.f32.gmra.mrb[4].mxu1 %v1420_v3  ;;  %v3677_v3 = vld [vmem:[#allocation31_spill] sm:$0xff] }
 0x24b   :  { %763 = vmatprep.mubr.f32.mxu1 %v1434_v10  ;;  %v3681_v10 = vld [vmem:[#allocation35_spill] sm:$0xff] }
 0x24e   :  { %764 = vmatmul.mubr.f32.gmra.mrb[6].mxu1 %v1432_v9  ;;  %v3680_v9 = vld [vmem:[#allocation36_spill] sm:$0xff] }
 0x24f   :  { %768 = vmatprep.mubr.f32.mxu1 %v3513_v23  ;;  %v3687_v23 = vld [vmem:[#allocation45_spill] sm:$0xff] }
 0x252   :  { %769 = vmatmul.mubr.f32.gmra.mrb[8].mxu1 %v3516_v13  ;;  %v3688_v13 = vld [vmem:[#allocation44_spill] sm:$0xff] }
 0x253   :  { %773 = vmatprep.mubr.f32.mxu1 %v3517_v51  ;;  %v3689_v51 = vld [vmem:[#allocation43_spill] sm:$0xff] }
 0x256   :  { %774 = vmatmul.mubr.f32.gmra.mrb[10].mxu1 %v3520_v38  ;;  %v3692_v38 = vld [vmem:[#allocation48_spill] sm:$0xff] }
 0x257   :  { %778 = vmatprep.mubr.f32.mxu1 %v3522_v46  ;;  %v3694_v46 = vld [vmem:[#allocation46_spill] sm:$0xff] }
 0x25a   :  { %779 = vmatmul.mubr.f32.gmra.mrb[12].mxu1 %v3523_v48  ;;  %v3695_v48 = vld [vmem:[#allocation53_spill] sm:$0xff] }
 0x25b   :  { %783 = vmatprep.mubr.f32.mxu1 %v3524_v8  ;;  %v3696_v8 = vld [vmem:[#allocation52_spill] sm:$0xff] }
 0x25e   :  { %784 = vmatmul.mubr.f32.gmra.mrb[14].mxu1 %v3525_v7  ;;  %v3697_v7 = vld [vmem:[#allocation51_spill] sm:$0xff] }
 0x25f   :  { %788 = vmatprep.mubr.f32.mxu1 %v3526_v43  ;;  %v3698_v43 = vld [vmem:[#allocation50_spill] sm:$0xff] }
 0x262   :  { %789 = vmatmul.mubr.f32.gmra.mrb[16].mxu1 %v3527_v6  ;;  %v3699_v6 = vld [vmem:[#allocation57_spill] sm:$0xff] }
 0x263   :  { %793 = vmatprep.mubr.f32.mxu1 %v3528_v50  ;;  %v3700_v50 = vld [vmem:[#allocation56_spill] sm:$0xff] }
 0x266   :  { %794 = vmatmul.mubr.f32.gmra.mrb[18].mxu1 %v3529_v15  ;;  %v3701_v15 = vld [vmem:[#allocation55_spill] sm:$0xff] }
 0x267   :  { %798 = vmatprep.mubr.f32.mxu1 %v3530_v25  ;;  %v3702_v25 = vld [vmem:[#allocation54_spill] sm:$0xff] }
 0x26a   :  { %799 = vmatmul.mubr.f32.gmra.mrb[20].mxu1 %v3531_v54 }
 0x26b   :  { %803 = vmatprep.mubr.f32.mxu1 %v3532_v18  ;;  %v3703_v18 = vld [vmem:[#allocation7_spill] sm:$0xff] }
 0x26e   :  { %804 = vmatmul.mubr.f32.gmra.mrb[22].mxu1 %v3533_v56 }
 0x26f   :  { %808 = vmatprep.mubr.f32.mxu1 %v3534_v36 }
 0x272   :  { %809 = vmatmul.mubr.f32.gmra.mrb[24].mxu1 %v3535_v19  ;;  %v3704_v19 = vld [vmem:[#allocation9_spill] sm:$0xff] }
 0x273   :  { %813 = vmatprep.mubr.f32.mxu1 %v3536_v58 }
 0x276   :  { %814 = vmatmul.mubr.f32.gmra.mrb[26].mxu1 %v3537_v62 }
 0x277   :  { %818 = vmatprep.mubr.f32.mxu1 %v3538_v33  ;;  %v3705_v33 = vld [vmem:[#allocation60_spill] sm:$0xff] }
 0x27a   :  { %819 = vmatmul.mubr.f32.gmra.mrb[28].mxu1 %v3539_v39 }
 0x27b   :  { %823 = vmatprep.mubr.f32.mxu1 %v3540_v27  ;;  %v3706_v27 = vld [vmem:[#allocation6_spill] sm:$0xff] }
 0x27e   :  { %824 = vmatmul.mubr.f32.gmra.mrb[30].mxu1 %v3541_v63 }
 0x27f   :  { %828 = vmatprep.mubr.f32.mxu1 %v3542_v60 }
 0x282   :  { %829 = vmatmul.mubr.f32.gmra.mrb[32].mxu1 %v3543_v30  ;;  %v3707_v30 = vld [vmem:[#allocation8_spill] sm:$0xff] }
 0x283   :  { %833 = vmatprep.mubr.f32.mxu1 %v3544_v14 }
 0x286   :  { %834 = vmatmul.mubr.f32.gmra.mrb[34].mxu1 %v3545_v37  ;;  %v3693_v37 = vld [vmem:[#allocation47_spill] sm:$0xff] }
 0x287   :  { %838 = vmatprep.mubr.f32.mxu1 %v3546_v52  ;;  %v3691_v52 = vld [vmem:[#allocation49_spill] sm:$0xff] }
 0x28a   :  { %839 = vmatmul.mubr.f32.gmra.mrb[36].mxu1 %v3547_v22  ;;  %v3690_v22 = vld [vmem:[#allocation42_spill] sm:$0xff] }
 0x28b   :  { %843 = vmatprep.mubr.f32.mxu1 %v3677_v3  ;;  %v3711_v3 = vld [vmem:[#allocation72_spill] sm:$0xff] }
 0x28e   :  { %844 = vmatmul.mubr.f32.gmra.mrb[38].mxu1 %v3678_v4 }
 0x28f   :  { %848 = vmatprep.mubr.f32.mxu1 %v3679_v5  ;;  %v3712_v5 = vld [vmem:[#allocation10_spill] sm:$0xff] }
 0x292   :  { %849 = vmatmul.mubr.f32.gmra.mrb[40].mxu1 %v3680_v9 }
 0x293   :  { %853 = vmatprep.mubr.f32.mxu1 %v3681_v10 }
 0x296   :  { %854 = vmatmul.mubr.f32.gmra.mrb[42].mxu1 %v3682_v11  ;;  %v3713_v11 = vld [vmem:[#allocation12_spill] sm:$0xff] }
 0x297   :  { %858 = vmatprep.mubr.f32.mxu1 %v3683_v12 }
 0x29a   :  { %859 = vmatmul.mubr.f32.gmra.mrb[44].mxu1 %v3684_v55 }
 0x29b   :  { %863 = vmatprep.mubr.f32.mxu1 %v3685_v34  ;;  %v3714_v34 = vld [vmem:[#allocation81_spill] sm:$0xff] }
 0x29e   :  { %864 = vmatmul.mubr.f32.gmra.mrb[46].mxu1 %v3686_v24 }
 0x29f   :  { %868 = vmatprep.mubr.f32.mxu1 %v3687_v23  ;;  %v3715_v23 = vld [vmem:[#allocation15_spill] sm:$0xff] }
 0x2a2   :  { %869 = vmatmul.mubr.f32.gmra.mrb[48].mxu1 %v3688_v13 }
 0x2a3   :  { %873 = vmatprep.mubr.f32.mxu1 %v3689_v51 }
 0x2a6   :  { %874 = vmatmul.mubr.f32.gmra.mrb[50].mxu1 %v3690_v22  ;;  %v3716_v22 = vld [vmem:[#allocation17_spill] sm:$0xff] }
 0x2a7   :  { %878 = vmatprep.mubr.f32.mxu1 %v3691_v52 }
 0x2aa   :  { %879 = vmatmul.mubr.f32.gmra.mrb[52].mxu1 %v3692_v38 }
 0x2ab   :  { %883 = vmatprep.mubr.f32.mxu1 %v3693_v37  ;;  %v3717_v37 = vld [vmem:[#allocation82_spill] sm:$0xff] }
 0x2ae   :  { %884 = vmatmul.mubr.f32.gmra.mrb[54].mxu1 %v3694_v46 }
 0x2af   :  { %888 = vmatprep.mubr.f32.mxu1 %v3695_v48  ;;  %v3718_v48 = vld [vmem:[#allocation14_spill] sm:$0xff] }
 0x2b2   :  { %889 = vmatmul.mubr.f32.gmra.mrb[56].mxu1 %v3696_v8 }
 0x2b3   :  { %893 = vmatprep.mubr.f32.mxu1 %v3697_v7 }
 0x2b6   :  { %894 = vmatmul.mubr.f32.gmra.mrb[58].mxu1 %v3698_v43  ;;  %v3719_v43 = vld [vmem:[#allocation16_spill] sm:$0xff] }
 0x2b7   :  { %898 = vmatprep.mubr.f32.mxu1 %v3699_v6 }
 0x2ba   :  { %899 = vmatmul.mubr.f32.gmra.mrb[60].mxu1 %v3700_v50 }
 0x2bb   :  { %903 = vmatprep.mubr.f32.mxu1 %v3701_v15  ;;  %v3720_v15 = vld [vmem:[#allocation88_spill] sm:$0xff] }
 0x2be   :  { %904 = vmatmul.mubr.f32.gmra.mrb[62].mxu1 %v3702_v25 }
 0x315   :  { %v750_v54 = vpop.f32.mrb[0].mxu1 }
 0x316   :  { %v751_v56 = vadd.f32 %v750_v54, %v3703_v18  ;;  %v752_v36 = vpop.f32.mrb[1].mxu1  ;;  %v3721_v54 = vld [vmem:[#allocation19_spill] sm:$0xff] }
 0x317   :  { %v3722_v36 = vld [vmem:[#allocation21_spill] sm:$0xff] }
 0x318   :  { %v909_v58 = vmul.f32 %v751_v56, %v3704_v19 }
 0x319   :  { %v755_v62 = vpop.f32.mrb[2].mxu1 }
 0x31a   :  { %v1165_v39 = vmul.f32 %v3705_v33, %v909_v58  ;;  %v756_v63 = vadd.f32 %v755_v62, %v3706_v27  ;;  %v757_v60 = vpop.f32.mrb[3].mxu1  ;;  %v3723_v62 = vld [vmem:[#allocation96_spill] sm:$0xff] }
 0x31b   :  { %v3725_v60 = vld [vmem:[#allocation20_spill] sm:$0xff] }
 0x31c   :  { %1198 = vst.msk [vmem:[%s3155_s2] sm:$0xff] %vm1197_vm0, %v1165_v39  ;;  %v910_v14 = vmul.f32 %v756_v63, %v3707_v30  ;;  %v3724_v39 = vld [vmem:[#allocation18_spill] sm:$0xff] }
 0x31d   :  { %v760_v61 = vpop.f32.mrb[4].mxu1 }
 0x31e   :  { %v1166_v59 = vmul.f32 %v3708_v31, %v910_v14  ;;  %v761_v16 = vadd.f32 %v760_v61, %v3709_v17  ;;  %v762_v26 = vpop.f32.mrb[5].mxu1  ;;  %v3726_v61 = vld [vmem:[#allocation106_spill] sm:$0xff] }
 0x31f   :  { %v3728_v26 = vld [vmem:[#allocation25_spill] sm:$0xff] }
 0x320   :  { %1199 = vst.msk [vmem:[%s3155_s2 + $0x8] sm:$0xff] %vm1197_vm0, %v1166_v59  ;;  %v911_v28 = vmul.f32 %v761_v16, %v3710_v53  ;;  %v3727_v59 = vld [vmem:[#allocation23_spill] sm:$0xff] }
 0x321   :  { %v765_v0 = vpop.f32.mrb[6].mxu1 }
 0x322   :  { %v1167_v4 = vmul.f32 %v3711_v3, %v911_v28  ;;  %v766_v9 = vadd.f32 %v765_v0, %v3712_v5  ;;  %v767_v10 = vpop.f32.mrb[7].mxu1  ;;  %v3729_v0 = vld [vmem:[#allocation114_spill] sm:$0xff] }
 0x323   :  { %v3731_v10 = vld [vmem:[#allocation24_spill] sm:$0xff] }
 0x324   :  { %1200 = vst.msk [vmem:[%s3155_s2 + $0x10] sm:$0xff] %vm1197_vm0, %v1167_v4  ;;  %v912_v12 = vmul.f32 %v766_v9, %v3713_v11  ;;  %v3730_v4 = vld [vmem:[#allocation22_spill] sm:$0xff] }
 0x325   :  { %v770_v55 = vpop.f32.mrb[8].mxu1 }
 0x326   :  { %v1168_v24 = vmul.f32 %v3714_v34, %v912_v12  ;;  %v771_v13 = vadd.f32 %v770_v55, %v3715_v23  ;;  %v772_v51 = vpop.f32.mrb[9].mxu1  ;;  %v3732_v55 = vld [vmem:[#allocation119_spill] sm:$0xff] }
 0x327   :  { %v3734_v51 = vld [vmem:[#allocation29_spill] sm:$0xff] }
 0x328   :  { %1201 = vst.msk [vmem:[%s3155_s2 + $0x18] sm:$0xff] %vm1197_vm0, %v1168_v24  ;;  %v913_v52 = vmul.f32 %v771_v13, %v3716_v22  ;;  %v3733_v24 = vld [vmem:[#allocation27_spill] sm:$0xff] }
 0x329   :  { %v775_v38 = vpop.f32.mrb[10].mxu1 }
 0x32a   :  { %v1169_v46 = vmul.f32 %v3717_v37, %v913_v52  ;;  %v776_v8 = vadd.f32 %v775_v38, %v3718_v48  ;;  %v777_v7 = vpop.f32.mrb[11].mxu1  ;;  %v3735_v38 = vld [vmem:[#allocation121_spill] sm:$0xff] }
 0x32b   :  { %v3737_v7 = vld [vmem:[#allocation28_spill] sm:$0xff] }
 0x32c   :  { %1202 = vst.msk [vmem:[%s3155_s2 + $0x20] sm:$0xff] %vm1197_vm0, %v1169_v46  ;;  %v914_v6 = vmul.f32 %v776_v8, %v3719_v43  ;;  %v3736_v46 = vld [vmem:[#allocation26_spill] sm:$0xff] }
 0x32d   :  { %v780_v50 = vpop.f32.mrb[12].mxu1 }
 0x32e   :  { %v1170_v25 = vmul.f32 %v3720_v15, %v914_v6  ;;  %v781_v18 = vadd.f32 %v780_v50, %v3721_v54  ;;  %v782_v56 = vpop.f32.mrb[13].mxu1  ;;  %v3738_v50 = vld [vmem:[#allocation123_spill] sm:$0xff] }
 0x32f   :  { %v3740_v56 = vld [vmem:[#allocation33_spill] sm:$0xff] }
 0x330   :  { %1203 = vst.msk [vmem:[%s3155_s2 + $0x28] sm:$0xff] %vm1197_vm0, %v1170_v25  ;;  %v915_v19 = vmul.f32 %v781_v18, %v3722_v36  ;;  %v3739_v25 = vld [vmem:[#allocation61_spill] sm:$0xff] }
 0x331   :  { %v785_v58 = vpop.f32.mrb[14].mxu1 }
 0x332   :  { %v1171_v33 = vmul.f32 %v3723_v62, %v915_v19  ;;  %v786_v27 = vadd.f32 %v785_v58, %v3724_v39  ;;  %v787_v63 = vpop.f32.mrb[15].mxu1  ;;  %v3741_v58 = vld [vmem:[#allocation124_spill] sm:$0xff] }
 0x333   :  { %v3743_v63 = vld [vmem:[#allocation32_spill] sm:$0xff] }
 0x334   :  { %1204 = vst.msk [vmem:[%s3155_s2 + $0x30] sm:$0xff] %vm1197_vm0, %v1171_v33  ;;  %v916_v30 = vmul.f32 %v786_v27, %v3725_v60  ;;  %v3742_v33 = vld [vmem:[#allocation58_spill] sm:$0xff] }
 0x335   :  { %v790_v14 = vpop.f32.mrb[16].mxu1 }
 0x336   :  { %v1172_v31 = vmul.f32 %v3726_v61, %v916_v30  ;;  %v791_v17 = vadd.f32 %v790_v14, %v3727_v59  ;;  %v792_v16 = vpop.f32.mrb[17].mxu1  ;;  %v3744_v14 = vld [vmem:[#allocation125_spill] sm:$0xff] }
 0x337   :  { %v3746_v16 = vld [vmem:[#allocation59_spill] sm:$0xff] }
 0x338   :  { %1205 = vst.msk [vmem:[%s3155_s2 + $0x38] sm:$0xff] %vm1197_vm0, %v1172_v31  ;;  %v917_v53 = vmul.f32 %v791_v17, %v3728_v26  ;;  %v3745_v31 = vld [vmem:[#allocation66_spill] sm:$0xff] }
 0x339   :  { %v795_v28 = vpop.f32.mrb[18].mxu1 }
 0x33a   :  { %v1173_v3 = vmul.f32 %v3729_v0, %v917_v53  ;;  %v796_v5 = vadd.f32 %v795_v28, %v3730_v4  ;;  %v797_v9 = vpop.f32.mrb[19].mxu1  ;;  %v3747_v28 = vld [vmem:[#allocation126_spill] sm:$0xff] }
 0x33b   :  { %v3749_v9 = vld [vmem:[#allocation62_spill] sm:$0xff] }
 0x33c   :  { %1206 = vst.msk [vmem:[%s3155_s2 + $0x40] sm:$0xff] %vm1197_vm0, %v1173_v3  ;;  %v918_v11 = vmul.f32 %v796_v5, %v3731_v10  ;;  %v3748_v3 = vld [vmem:[#allocation63_spill] sm:$0xff] }
 0x33d   :  { %v800_v12 = vpop.f32.mrb[20].mxu1 }
 0x33e   :  { %v1174_v34 = vmul.f32 %v3732_v55, %v918_v11  ;;  %v801_v23 = vadd.f32 %v800_v12, %v3733_v24  ;;  %v802_v13 = vpop.f32.mrb[21].mxu1  ;;  %v3750_v12 = vld [vmem:[#allocation127_spill] sm:$0xff] }
 0x33f   :  { %v3752_v13 = vld [vmem:[#allocation64_spill] sm:$0xff] }
 0x340   :  { %1207 = vst.msk [vmem:[%s3155_s2 + $0x48] sm:$0xff] %vm1197_vm0, %v1174_v34  ;;  %v919_v22 = vmul.f32 %v801_v23, %v3734_v51  ;;  %v3751_v34 = vld [vmem:[#allocation69_spill] sm:$0xff] }
 0x341   :  { %v805_v52 = vpop.f32.mrb[22].mxu1 }
 0x342   :  { %v1175_v37 = vmul.f32 %v3735_v38, %v919_v22  ;;  %v806_v48 = vadd.f32 %v805_v52, %v3736_v46  ;;  %v807_v8 = vpop.f32.mrb[23].mxu1  ;;  %v3753_v52 = vld [vmem:[#allocation128_spill] sm:$0xff] }
 0x343   :  { %v3755_v8 = vld [vmem:[#allocation65_spill] sm:$0xff] }
 0x344   :  { %1208 = vst.msk [vmem:[%s3155_s2 + $0x50] sm:$0xff] %vm1197_vm0, %v1175_v37  ;;  %v920_v43 = vmul.f32 %v806_v48, %v3737_v7  ;;  %v3754_v37 = vld [vmem:[#allocation67_spill] sm:$0xff] }
 0x345   :  { %v810_v6 = vpop.f32.mrb[24].mxu1 }
 0x346   :  { %v1176_v15 = vmul.f32 %v3738_v50, %v920_v43  ;;  %v811_v54 = vadd.f32 %v810_v6, %v3739_v25  ;;  %v812_v18 = vpop.f32.mrb[25].mxu1  ;;  %v3756_v6 = vld [vmem:[#allocation129_spill] sm:$0xff] }
 0x347   :  { %v3758_v18 = vld [vmem:[#allocation68_spill] sm:$0xff] }
 0x348   :  { %1209 = vst.msk [vmem:[%s3155_s2 + $0x58] sm:$0xff] %vm1197_vm0, %v1176_v15  ;;  %v921_v36 = vmul.f32 %v811_v54, %v3740_v56  ;;  %v3757_v15 = vld [vmem:[#allocation75_spill] sm:$0xff] }
 0x349   :  { %v815_v19 = vpop.f32.mrb[26].mxu1 }
 0x34a   :  { %v1177_v62 = vmul.f32 %v3741_v58, %v921_v36  ;;  %v816_v39 = vadd.f32 %v815_v19, %v3742_v33  ;;  %v817_v27 = vpop.f32.mrb[27].mxu1  ;;  %v3759_v19 = vld [vmem:[#allocation130_spill] sm:$0xff] }
 0x34b   :  { %v3761_v27 = vld [vmem:[#allocation70_spill] sm:$0xff] }
 0x34c   :  { %1210 = vst.msk [vmem:[%s3155_s2 + $0x60] sm:$0xff] %vm1197_vm0, %v1177_v62  ;;  %v922_v60 = vmul.f32 %v816_v39, %v3743_v63  ;;  %v3760_v62 = vld [vmem:[#allocation73_spill] sm:$0xff] }
 0x34d   :  { %v820_v30 = vpop.f32.mrb[28].mxu1 }
 0x34e   :  { %v1178_v61 = vmul.f32 %v3744_v14, %v922_v60  ;;  %v821_v59 = vadd.f32 %v820_v30, %v3745_v31  ;;  %v822_v17 = vpop.f32.mrb[29].mxu1  ;;  %v3762_v30 = vld [vmem:[#allocation131_spill] sm:$0xff] }
 0x350   :  { %1211 = vst.msk [vmem:[%s3155_s2 + $0x68] sm:$0xff] %vm1197_vm0, %v1178_v61  ;;  %v923_v26 = vmul.f32 %v821_v59, %v3746_v16  ;;  %v3763_v59 = vld [vmem:[#allocation74_spill] sm:$0xff] }
 0x351   :  { %v825_v53 = vpop.f32.mrb[30].mxu1 }
 0x352   :  { %v1179_v0 = vmul.f32 %v3747_v28, %v923_v26  ;;  %v826_v4 = vadd.f32 %v825_v53, %v3748_v3  ;;  %v827_v5 = vpop.f32.mrb[31].mxu1  ;;  %v3764_v26 = vld [vmem:[#allocation132_spill] sm:$0xff]  ;;  %v3765_v28 = vld [vmem:[#allocation79_spill] sm:$0xff] }
 0x354   :  { %1212 = vst.msk [vmem:[%s3155_s2 + $0x70] sm:$0xff] %vm1197_vm0, %v1179_v0  ;;  %v924_v10 = vmul.f32 %v826_v4, %v3749_v9  ;;  %v3767_v9 = vld [vmem:[#allocation133_spill] sm:$0xff] }
 0x355   :  { %v830_v11 = vpop.f32.mrb[32].mxu1 }
 0x356   :  { %v1180_v55 = vmul.f32 %v3750_v12, %v924_v10  ;;  %v831_v24 = vadd.f32 %v830_v11, %v3751_v34  ;;  %v832_v23 = vpop.f32.mrb[33].mxu1 }
 0x358   :  { %1213 = vst.msk [vmem:[%s3155_s2 + $0x78] sm:$0xff] %vm1197_vm0, %v1180_v55  ;;  %v925_v51 = vmul.f32 %v831_v24, %v3752_v13  ;;  %v3768_v24 = vld [vmem:[#allocation134_spill] sm:$0xff] }
 0x359   :  { %v835_v22 = vpop.f32.mrb[34].mxu1  ;;  %v3769_v13 = vld [vmem:[#allocation78_spill] sm:$0xff] }
 0x35a   :  { %v1181_v38 = vmul.f32 %v3753_v52, %v925_v51  ;;  %v836_v46 = vadd.f32 %v835_v22, %v3754_v37  ;;  %v837_v48 = vpop.f32.mrb[35].mxu1  ;;  %v3771_v37 = vld [vmem:[#allocation135_spill] sm:$0xff] }
 0x35c   :  { %1214 = vst.msk [vmem:[%s3155_s2 + $0x80] sm:$0xff] %vm1197_vm0, %v1181_v38  ;;  %v926_v7 = vmul.f32 %v836_v46, %v3755_v8 }
 0x35d   :  { %v840_v43 = vpop.f32.mrb[36].mxu1 }
 0x35e   :  { %v1182_v50 = vmul.f32 %v3756_v6, %v926_v7  ;;  %v841_v25 = vadd.f32 %v840_v43, %v3757_v15  ;;  %v842_v54 = vpop.f32.mrb[37].mxu1  ;;  %v3772_v43 = vld [vmem:[#allocation136_spill] sm:$0xff] }
 0x360   :  { %1215 = vst.msk [vmem:[%s3155_s2 + $0x88] sm:$0xff] %vm1197_vm0, %v1182_v50  ;;  %v927_v56 = vmul.f32 %v841_v25, %v3758_v18  ;;  %v3773_v50 = vld [vmem:[#allocation85_spill] sm:$0xff] }
 0x361   :  { %v845_v36 = vpop.f32.mrb[38].mxu1 }
 0x362   :  { %v1183_v58 = vmul.f32 %v3759_v19, %v927_v56  ;;  %v846_v33 = vadd.f32 %v845_v36, %v3760_v62  ;;  %v847_v39 = vpop.f32.mrb[39].mxu1  ;;  %v3775_v56 = vld [vmem:[#allocation137_spill] sm:$0xff] }
 0x364   :  { %1216 = vst.msk [vmem:[%s3155_s2 + $0x90] sm:$0xff] %vm1197_vm0, %v1183_v58  ;;  %v928_v63 = vmul.f32 %v846_v33, %v3761_v27  ;;  %v3776_v33 = vld [vmem:[#allocation138_spill] sm:$0xff]  ;;  %v3777_v27 = vld [vmem:[#allocation84_spill] sm:$0xff] }
 0x365   :  { %v850_v60 = vpop.f32.mrb[40].mxu1 }
 0x366   :  { %v1184_v14 = vmul.f32 %v3762_v30, %v928_v63  ;;  %v851_v61 = vadd.f32 %v850_v60, %v2764_v32  ;;  %v852_v31 = vpop.f32.mrb[41].mxu1  ;;  %v3766_v32 = vld [vmem:[#allocation76_spill] sm:$0xff] }
 0x368   :  { %1217 = vst.msk [vmem:[%s3155_s2 + $0x98] sm:$0xff] %vm1197_vm0, %v1184_v14  ;;  %v929_v17 = vmul.f32 %v851_v61, %v3763_v59  ;;  %v3779_v61 = vld [vmem:[#allocation5_spill] sm:$0xff] }
 0x369   :  { %v855_v16 = vpop.f32.mrb[42].mxu1 }
 0x36a   :  { %v1185_v53 = vmul.f32 %v3764_v26, %v929_v17  ;;  %v856_v0 = vadd.f32 %v855_v16, %v3765_v28  ;;  %v857_v3 = vpop.f32.mrb[43].mxu1  ;;  %v3780_v26 = vld [vmem:[#allocation139_spill] sm:$0xff] }
 0x36c   :  { %1218 = vst.msk [vmem:[%s3155_s2 + $0xa0] sm:$0xff] %vm1197_vm0, %v1185_v53  ;;  %v930_v4 = vmul.f32 %v856_v0, %v3766_v32  ;;  %v3781_v32 = vld [vmem:[#allocation4_spill] sm:$0xff] }
 0x36d   :  { %v860_v5 = vpop.f32.mrb[44].mxu1 }
 0x36e   :  { %v1186_v10 = vmul.f32 %v3767_v9, %v930_v4  ;;  %v861_v11 = vadd.f32 %v860_v5, %v2783_v42  ;;  %v862_v12 = vpop.f32.mrb[45].mxu1  ;;  %v3770_v42 = vld [vmem:[#allocation77_spill] sm:$0xff] }
 0x370   :  { %1219 = vst.msk [vmem:[%s3155_s2 + $0xa8] sm:$0xff] %vm1197_vm0, %v1186_v10  ;;  %v931_v55 = vmul.f32 %v861_v11, %v2775_v2  ;;  %v3782_v10 = vld [vmem:[#allocation3_spill] sm:$0xff] }
 0x371   :  { %v865_v34 = vpop.f32.mrb[46].mxu1 }
 0x372   :  { %v1187_v23 = vmul.f32 %v3768_v24, %v931_v55  ;;  %v866_v51 = vadd.f32 %v865_v34, %v3769_v13  ;;  %v867_v22 = vpop.f32.mrb[47].mxu1 }
 0x374   :  { %1220 = vst.msk [vmem:[%s3155_s2 + $0xb0] sm:$0xff] %vm1197_vm0, %v1187_v23  ;;  %v932_v52 = vmul.f32 %v866_v51, %v3770_v42 }
 0x375   :  { %v870_v38 = vpop.f32.mrb[48].mxu1 }
 0x376   :  { %v1188_v46 = vmul.f32 %v3771_v37, %v932_v52  ;;  %v871_v48 = vadd.f32 %v870_v38, %v2802_v45  ;;  %v872_v8 = vpop.f32.mrb[49].mxu1  ;;  %v3774_v45 = vld [vmem:[#allocation80_spill] sm:$0xff] }
 0x378   :  { %1221 = vst.msk [vmem:[%s3155_s2 + $0xb8] sm:$0xff] %vm1197_vm0, %v1188_v46  ;;  %v933_v2 = vmul.f32 %v871_v48, %v2794_v35 }
 0x379   :  { %v875_v7 = vpop.f32.mrb[50].mxu1 }
 0x37a   :  { %v1189_v6 = vmul.f32 %v3772_v43, %v933_v2  ;;  %v876_v15 = vadd.f32 %v875_v7, %v3773_v50  ;;  %v877_v25 = vpop.f32.mrb[51].mxu1 }
 0x37c   :  { %1222 = vst.msk [vmem:[%s3155_s2 + $0xc0] sm:$0xff] %vm1197_vm0, %v1189_v6  ;;  %v934_v54 = vmul.f32 %v876_v15, %v3774_v45 }
 0x37d   :  { %v880_v18 = vpop.f32.mrb[52].mxu1 }
 0x37e   :  { %v1190_v36 = vmul.f32 %v3775_v56, %v934_v54  ;;  %v881_v19 = vadd.f32 %v880_v18, %v2821_v47  ;;  %v882_v58 = vpop.f32.mrb[53].mxu1  ;;  %v3778_v47 = vld [vmem:[#allocation83_spill] sm:$0xff] }
 0x380   :  { %1223 = vst.msk [vmem:[%s3155_s2 + $0xc8] sm:$0xff] %vm1197_vm0, %v1190_v36  ;;  %v935_v35 = vmul.f32 %v881_v19, %v2813_v44 }
 0x381   :  { %v885_v62 = vpop.f32.mrb[54].mxu1 }
 0x382   :  { %v1191_v39 = vmul.f32 %v3776_v33, %v935_v35  ;;  %v886_v63 = vadd.f32 %v885_v62, %v3777_v27  ;;  %v887_v60 = vpop.f32.mrb[55].mxu1 }
 0x384   :  { %1224 = vst.msk [vmem:[%s3155_s2 + $0xd0] sm:$0xff] %vm1197_vm0, %v1191_v39  ;;  %v936_v30 = vmul.f32 %v886_v63, %v3778_v47 }
 0x385   :  { %v890_v14 = vpop.f32.mrb[56].mxu1 }
 0x386   :  { %v1192_v31 = vmul.f32 %v3779_v61, %v936_v30  ;;  %v891_v59 = vadd.f32 %v890_v14, %v2840_v57  ;;  %v892_v17 = vpop.f32.mrb[57].mxu1 }
 0x388   :  { %1225 = vst.msk [vmem:[%s3155_s2 + $0xd8] sm:$0xff] %vm1197_vm0, %v1192_v31  ;;  %v937_v44 = vmul.f32 %v891_v59, %v2832_v1 }
 0x389   :  { %v895_v16 = vpop.f32.mrb[58].mxu1 }
 0x38a   :  { %v1193_v53 = vmul.f32 %v3780_v26, %v937_v44  ;;  %v896_v28 = vadd.f32 %v895_v16, %v2843_v41  ;;  %v897_v0 = vpop.f32.mrb[59].mxu1 }
 0x38c   :  { %1226 = vst.msk [vmem:[%s3155_s2 + $0xe0] sm:$0xff] %vm1197_vm0, %v1193_v53  ;;  %v938_v57 = vmul.f32 %v896_v28, %v2836_v20 }
 0x38d   :  { %v900_v3 = vpop.f32.mrb[60].mxu1 }
 0x38e   :  { %v1194_v4 = vmul.f32 %v3781_v32, %v938_v57  ;;  %v901_v5 = vadd.f32 %v900_v3, %v2859_v49  ;;  %v902_v9 = vpop.f32.mrb[61].mxu1  ;;  %v3783_v49 = vld [vmem:[#allocation2_spill] sm:$0xff] }
 0x390   :  { %1227 = vst.msk [vmem:[%s3155_s2 + $0xe8] sm:$0xff] %vm1197_vm0, %v1194_v4  ;;  %v939_v1 = vmul.f32 %v901_v5, %v2851_v29 }
 0x391   :  { %v905_v41 = vpop.f32.mrb[62].mxu1 }
 0x392   :  { %v1195_v11 = vmul.f32 %v3782_v10, %v939_v1  ;;  %v906_v12 = vadd.f32 %v905_v41, %v2862_v21  ;;  %v907_v55 = vpop.f32.mrb[63].mxu1 }
 0x394   :  { %1228 = vst.msk [vmem:[%s3155_s2 + $0xf0] sm:$0xff] %vm1197_vm0, %v1195_v11  ;;  %v940_v20 = vmul.f32 %v906_v12, %v2855_v40 }
 0x396   :  { %v1196_v34 = vmul.f32 %v3783_v49, %v940_v20 }
 0x398   :  { %1229 = vst.msk [vmem:[%s3155_s2 + $0xf8] sm:$0xff] %vm1197_vm0, %v1196_v34 }

</bundles_post_ra>
